<compile_context>
chip_gen: v5e
topology: v5e:2x2
jax: 0.10.0
libtpu: 0.0.40
codegen_flags: <defaults>
</compile_context>

<pallas_src>
import math
import functools

import jax
import jax.numpy as jnp
import numpy as np
from jax.experimental import pallas as pl
from jax.experimental.pallas import tpu as pltpu


def _softplus(x):
    # numerically stable softplus from exp/log/abs/max only
    return jnp.maximum(x, 0.0) + jnp.log(1.0 + jnp.exp(-jnp.abs(x)))


def _mixer_kernel(hs_ref,
                  w_in_x_ref, w_in_z_ref,
                  w_conv_x_ref, w_conv_z_ref,
                  w_xp_ref, w_dt_ref, dt_bias_ref,
                  a_ref, d_skip_ref,
                  w_out_y_ref, w_out_z_ref,
                  out_ref,
                  pad_scr, da_scr, h_scr,
                  *, L, d_half, d_state, d_conv, dt_rank):
    f32 = jnp.float32
    bf16 = jnp.bfloat16
    n_flat = d_state * d_half
    hs = hs_ref[0]                                                   # (L, d_model) bf16

    # ------------- in_proj (x / z halves), bf16 MXU, f32 accumulate ---------
    x = jnp.dot(hs, w_in_x_ref[...], preferred_element_type=f32)     # (L, d_half)
    z = jnp.dot(hs, w_in_z_ref[...], preferred_element_type=f32)

    # ------------- depthwise conv1d along L, padding='same', + SiLU ---------
    # F.conv1d(padding='same'), K=4 -> pad_left=1, pad_right=2:
    #   out[t] = sum_k w[k] * in[t + k - pad_left]
    pad_l = (d_conv - 1) // 2
    pad_r = (d_conv - 1) - pad_l
    # zero only the halo rows, once; both convs reuse them
    if pad_l > 0:
        pad_scr[0:pad_l, :] = jnp.zeros((pad_l, d_half), f32)
    if pad_r > 0:
        pad_scr[L + pad_l:L + pad_l + pad_r, :] = jnp.zeros((pad_r, d_half), f32)

    def silu(v):
        # v * sigmoid(v); the divide maps to the EUP approx reciprocal
        return v * pl.reciprocal(1.0 + jnp.exp(-v), approx=True)

    def dwconv(v, w_ref):
        pad_scr[pad_l:pad_l + L, :] = v
        acc = jnp.zeros((L, d_half), f32)
        for k in range(d_conv):                                      # static unroll
            acc = acc + pad_scr[k:k + L, :] * w_ref[k:k + 1, :]
        return acc

    x = silu(dwconv(x, w_conv_x_ref))             # u in selective_scan terms
    z = silu(dwconv(z, w_conv_z_ref))
    xb = x.astype(bf16)

    # ------------- fused x_proj -> (dt_low | B | C), then dt_proj (f32) ------
    xdbl = jnp.dot(xb, w_xp_ref[...], preferred_element_type=f32)    # (L, R+2N)

    # dt_proj applies its bias, and the module *also* passes the same bias as
    # delta_bias into selective_scan -> bias is added twice before softplus
    # (this matches the reference module's forward).
    dt_bias = dt_bias_ref[...]
    dt = jnp.dot(xdbl[:, :dt_rank], w_dt_ref[...],
                 preferred_element_type=f32) + dt_bias
    delta = _softplus(dt + dt_bias)                                   # (L, d_half)
    du = delta * x                                                    # delta * u

    # ------------- selective scan, flattened state layout j = n*d_half + d --
    # Bulk per-n construction (dense lane-block writes, no 0/1 matmuls):
    #   dA[l, (n,d)]  = exp(delta_l[d] * A[d, n])
    #   dBu[l, (n,d)] = B_l[n] * delta_l[d] * u_l[d]
    for n in range(d_state):                                          # static unroll
        lo = n * d_half
        a_n = a_ref[n:n + 1, :]                                       # (1, d_half)
        b_n = xdbl[:, dt_rank + n:dt_rank + n + 1]                    # (L, 1)
        da_scr[:, lo:lo + d_half] = jnp.exp(delta * a_n)
        h_scr[:, lo:lo + d_half] = du * b_n                           # dBu, later h_l

    # Serial recurrence: h_l = dA_l * h_{l-1} + dBu_l (pure vreg-carried FMA).
    def scan_step(l, h):
        row = pl.ds(l, 1)
        h = da_scr[row, :] * h + h_scr[row, :]
        h_scr[row, :] = h                      # keep state for the C contraction
        return h

    h0 = jnp.zeros((1, n_flat), f32)
    if L <= 64:
        h = h0
        for l in range(L):                     # full static unroll for small L
            h = scan_step(l, h)
    else:
        unroll = next(u for u in (8, 4, 2, 1) if L % u == 0)
        jax.lax.fori_loop(0, L, scan_step, h0, unroll=unroll)

    # ------------- y_t[d] = sum_n C[t, n] * h_t[n, d], D skip, out_proj ------
    y = x * d_skip_ref[...]
    c0 = dt_rank + d_state
    for n in range(d_state):                                          # static unroll
        lo = n * d_half
        y = y + xdbl[:, c0 + n:c0 + n + 1] * h_scr[:, lo:lo + d_half]

    # concat([y, z]) @ W_out folded into two bf16 matmuls, f32 accumulate.
    out = (jnp.dot(y.astype(bf16), w_out_y_ref[...], preferred_element_type=f32)
           + jnp.dot(z.astype(bf16), w_out_z_ref[...], preferred_element_type=f32))
    out_ref[0] = out.astype(out_ref.dtype)


def _pick_vmem_limit():
    """Per-generation VMEM budget: ~5/8 of per-core VMEM, clamped to [32, 112] MiB."""
    cap = 128 * 1024 * 1024
    try:
        info = pltpu.get_tpu_info()
        cap = int(getattr(info, "vmem_capacity_bytes", cap) or cap)
    except Exception:
        pass
    return max(32 * 1024 * 1024, min((cap * 5) // 8, 112 * 1024 * 1024))


def mamba_vision_mixer(hs, params, *, d_state, d_conv):
    (w_in_x, w_in_z, w_conv_x, w_conv_z, w_xp, w_dt, dt_bias, a_nd, d_skip,
     w_out_y, w_out_z) = params
    B, L, d_model = hs.shape
    d_half = w_in_x.shape[1]
    dt_rank = w_xp.shape[1] - 2 * d_state
    n_flat = d_state * d_half
    f32 = jnp.float32

    kernel = functools.partial(_mixer_kernel, L=L, d_half=d_half,
                               d_state=d_state, d_conv=d_conv, dt_rank=dt_rank)

    inputs = (hs.astype(jnp.bfloat16),
              w_in_x, w_in_z, w_conv_x, w_conv_z,
              w_xp, w_dt, dt_bias, a_nd, d_skip, w_out_y, w_out_z)

    in_specs = [pl.BlockSpec((1, L, d_model), lambda b: (b, 0, 0))]
    # Grid-invariant weights: constant index_map, full-shape blocks (all 2-D).
    in_specs += [pl.BlockSpec(w.shape, lambda b: (0, 0)) for w in inputs[1:]]

    return pl.pallas_call(
        kernel,
        out_shape=jax.ShapeDtypeStruct((B, L, d_model), jnp.float32),
        grid=(B,),
        in_specs=in_specs,
        out_specs=pl.BlockSpec((1, L, d_model), lambda b: (b, 0, 0)),
        scratch_shapes=[
            pltpu.VMEM((L + d_conv - 1, d_half), f32),   # conv input with halo rows
            pltpu.VMEM((L, n_flat), f32),                # dA, flattened (n, d)
            pltpu.VMEM((L, n_flat), f32),                # dBu, then scan states h_l
        ],
        compiler_params=pltpu.CompilerParams(
            dimension_semantics=("parallel",),
            vmem_limit_bytes=_pick_vmem_limit()),
    )(*inputs)


def init_params(key, d_model, d_state=16, d_conv=4, expand=2,
                dt_min=0.001, dt_max=0.1, dt_init_floor=1e-4):
    """Deterministic synthetic parameters matching MambaVisionMixer.__init__ shapes."""
    d_inner = int(expand * d_model)
    d_half = d_inner // 2
    dt_rank = math.ceil(d_model / 16)
    f32, bf16 = jnp.float32, jnp.bfloat16
    ks = jax.random.split(key, 8)

    # Linear weights stored pre-transposed so that y = x @ W; big projection
    # weights are kept in bf16 (MXU-native); per-channel params and the tiny
    # dt_proj weight stay f32.
    w_in = jax.random.normal(ks[0], (d_model, d_inner), f32) / math.sqrt(d_model)
    w_xp = jax.random.normal(ks[1], (d_half, dt_rank + 2 * d_state), f32) / math.sqrt(d_half)
    dt_init_std = dt_rank ** -0.5
    w_dt = jax.random.uniform(ks[2], (dt_rank, d_half), f32,
                              minval=-dt_init_std, maxval=dt_init_std)
    dt = jnp.exp(jax.random.uniform(ks[3], (d_half,), f32)
                 * (math.log(dt_max) - math.log(dt_min)) + math.log(dt_min))
    dt = jnp.maximum(dt, dt_init_floor)
    dt_bias = dt + jnp.log(-jnp.expm1(-dt))          # inverse-softplus init (dt_proj.bias)

    A = jnp.tile(jnp.arange(1, d_state + 1, dtype=f32)[None, :], (d_half, 1))
    a_nd = (-A).T                                    # (N, d_half), A = -exp(A_log)
    d_skip = jnp.ones((d_half,), f32)                # D parameter

    w_out = jax.random.normal(ks[4], (d_inner, d_model), f32) / math.sqrt(d_inner)
    w_conv_x = jax.random.normal(ks[5], (d_conv, d_half), f32) * 0.5   # (K, ch) depthwise
    w_conv_z = jax.random.normal(ks[6], (d_conv, d_half), f32) * 0.5
    # conv bias: the module uses bias=conv_bias // 2 == 0 -> no conv bias.

    params = (w_in[:, :d_half].astype(bf16), w_in[:, d_half:].astype(bf16),
              w_conv_x, w_conv_z,
              w_xp.astype(bf16),                      # fused x_proj (d_half, R + 2N)
              w_dt,                                   # f32 (R, d_half)
              dt_bias[None, :], a_nd, d_skip[None, :],
              w_out[:d_half, :].astype(bf16), w_out[d_half:, :].astype(bf16))
    return params


def ref_forward(hs, params, *, d_state, d_conv):
    """Pure-JAX reference reproducing the PyTorch forward semantics (f32 math)."""
    (w_in_x, w_in_z, w_conv_x, w_conv_z, w_xp, w_dt, dt_bias, a_nd, d_skip,
     w_out_y, w_out_z) = params
    f32 = jnp.float32
    up = lambda w: w.astype(f32)
    B, L, _ = hs.shape
    d_half = w_in_x.shape[1]
    dt_rank = w_xp.shape[1] - 2 * d_state

    x = hs @ up(w_in_x)
    z = hs @ up(w_in_z)

    pad_l = (d_conv - 1) // 2
    pad_r = (d_conv - 1) - pad_l

    def conv(v, w):
        vp = jnp.pad(v, ((0, 0), (pad_l, pad_r), (0, 0)))
        return sum(vp[:, k:k + L, :] * w[k][None, None, :] for k in range(d_conv))

    silu = lambda v: v * jax.nn.sigmoid(v)
    x = silu(conv(x, w_conv_x))
    z = silu(conv(z, w_conv_z))

    x_dbl = x @ up(w_xp)
    dt_low = x_dbl[..., :dt_rank]
    Bm = x_dbl[..., dt_rank:dt_rank + d_state]                       # (B, L, N)
    Cm = x_dbl[..., dt_rank + d_state:]
    dt = dt_low @ w_dt + dt_bias                                     # dt_proj (with bias)
    delta = _softplus(dt + dt_bias)                                  # + delta_bias, softplus
    A = a_nd.T                                                       # (d_half, N), negative

    def scan_one(xb, db, Bb, Cb):
        def step(h, inp):
            d_l, u_l, B_l, C_l = inp
            dA = jnp.exp(d_l[:, None] * A)
            h = dA * h + (d_l * u_l)[:, None] * B_l[None, :]
            return h, (h * C_l[None, :]).sum(-1)
        h0 = jnp.zeros((d_half, d_state), f32)
        _, ys = jax.lax.scan(step, h0, (db, xb, Bb, Cb))
        return ys

    y = jax.vmap(scan_one)(x, delta, Bm, Cm)
    y = y + x * d_skip
    return y @ up(w_out_y) + z @ up(w_out_z)


if __name__ == "__main__":
    B, L, d_model = 2, 16, 32
    d_state, d_conv, expand = 16, 4, 2

    key = jax.random.PRNGKey(0)
    kp, kx = jax.random.split(key)
    params = init_params(kp, d_model, d_state=d_state, d_conv=d_conv, expand=expand)
    hidden_states = jax.random.normal(kx, (B, L, d_model), jnp.float32)
    # round inputs to bf16 grid so kernel (bf16 activations) and f32 reference
    # consume identical values; the remaining difference is accumulation only.
    hidden_states = hidden_states.astype(jnp.bfloat16).astype(jnp.float32)

    out = mamba_vision_mixer(hidden_states, params, d_state=d_state, d_conv=d_conv)
    out = jax.block_until_ready(out)

    ref = ref_forward(hidden_states, params, d_state=d_state, d_conv=d_conv)
    assert out.shape == (B, L, d_model), out.shape
    if not np.allclose(np.asarray(out), np.asarray(ref), rtol=5e-2, atol=5e-2):
        max_err = float(jnp.max(jnp.abs(out - ref)))
        raise AssertionError(f"kernel / reference mismatch, max abs err = {max_err}")
    print("KERNEL_OK")
</pallas_src>

<mosaic_0001>
module attributes {stable_mosaic.version = 11 : i64} {
  func.func @_mixer_kernel(%arg0: i32, %arg1: memref<1x16x32xbf16, #tpu.memory_space<vmem>>, %arg2: memref<32x32xbf16, #tpu.memory_space<vmem>>, %arg3: memref<32x32xbf16, #tpu.memory_space<vmem>>, %arg4: memref<4x32xf32, #tpu.memory_space<vmem>>, %arg5: memref<4x32xf32, #tpu.memory_space<vmem>>, %arg6: memref<32x34xbf16, #tpu.memory_space<vmem>>, %arg7: memref<2x32xf32, #tpu.memory_space<vmem>>, %arg8: memref<1x32xf32, #tpu.memory_space<vmem>>, %arg9: memref<16x32xf32, #tpu.memory_space<vmem>>, %arg10: memref<1x32xf32, #tpu.memory_space<vmem>>, %arg11: memref<32x32xbf16, #tpu.memory_space<vmem>>, %arg12: memref<32x32xbf16, #tpu.memory_space<vmem>>, %arg13: memref<1x16x32xf32, #tpu.memory_space<vmem>>, %arg14: memref<19x32xf32, #tpu.memory_space<vmem>>, %arg15: memref<16x512xf32, #tpu.memory_space<vmem>>, %arg16: memref<16x512xf32, #tpu.memory_space<vmem>>) attributes {dimension_semantics = [#tpu.dimension_semantics<parallel>], iteration_bounds = array<i64: 2>, scalar_prefetch = 0 : i64, scratch_operands = 3 : i64, tpu.core_type = #tpu.core_type<tc>, window_params = [{transform_indices = @transform_0, window_bounds = array<i64: 1, 16, 32>}, {pipeline_mode = #tpu.pipeline_mode<synchronous>, transform_indices = @transform_1, window_bounds = array<i64: 32, 32>}, {pipeline_mode = #tpu.pipeline_mode<synchronous>, transform_indices = @transform_2, window_bounds = array<i64: 32, 32>}, {pipeline_mode = #tpu.pipeline_mode<synchronous>, transform_indices = @transform_3, window_bounds = array<i64: 4, 32>}, {pipeline_mode = #tpu.pipeline_mode<synchronous>, transform_indices = @transform_4, window_bounds = array<i64: 4, 32>}, {pipeline_mode = #tpu.pipeline_mode<synchronous>, transform_indices = @transform_5, window_bounds = array<i64: 32, 34>}, {pipeline_mode = #tpu.pipeline_mode<synchronous>, transform_indices = @transform_6, window_bounds = array<i64: 2, 32>}, {pipeline_mode = #tpu.pipeline_mode<synchronous>, transform_indices = @transform_7, window_bounds = array<i64: 1, 32>}, {pipeline_mode = #tpu.pipeline_mode<synchronous>, transform_indices = @transform_8, window_bounds = array<i64: 16, 32>}, {pipeline_mode = #tpu.pipeline_mode<synchronous>, transform_indices = @transform_9, window_bounds = array<i64: 1, 32>}, {pipeline_mode = #tpu.pipeline_mode<synchronous>, transform_indices = @transform_10, window_bounds = array<i64: 32, 32>}, {pipeline_mode = #tpu.pipeline_mode<synchronous>, transform_indices = @transform_11, window_bounds = array<i64: 32, 32>}, {transform_indices = @transform_12, window_bounds = array<i64: 1, 16, 32>}]} {
    %c0 = arith.constant 0 : index
    %c0_0 = arith.constant 0 : index
    %c0_1 = arith.constant 0 : index
    %0 = vector.load %arg1[%c0, %c0_0, %c0_1] : memref<1x16x32xbf16, #tpu.memory_space<vmem>>, vector<1x16x32xbf16>
    %1 = vector.shape_cast %0 : vector<1x16x32xbf16> to vector<16x32xbf16>
    %c0_2 = arith.constant 0 : index
    %c0_3 = arith.constant 0 : index
    %2 = vector.load %arg2[%c0_2, %c0_3] : memref<32x32xbf16, #tpu.memory_space<vmem>>, vector<32x32xbf16>
    %cst = arith.constant dense<0.000000e+00> : vector<16x32xf32>
    %3 = tpu.matmul %1, %2, %cst {dimension_numbers = #tpu.dot_dimension_numbers<[1], [0], [0], [1], [0, 0, 1, 1], [], []>} : vector<16x32xbf16>, vector<32x32xbf16>, vector<16x32xf32> -> vector<16x32xf32>
    %c0_4 = arith.constant 0 : index
    %c0_5 = arith.constant 0 : index
    %4 = vector.load %arg3[%c0_4, %c0_5] : memref<32x32xbf16, #tpu.memory_space<vmem>>, vector<32x32xbf16>
    %cst_6 = arith.constant dense<0.000000e+00> : vector<16x32xf32>
    %5 = tpu.matmul %1, %4, %cst_6 {dimension_numbers = #tpu.dot_dimension_numbers<[1], [0], [0], [1], [0, 0, 1, 1], [], []>} : vector<16x32xbf16>, vector<32x32xbf16>, vector<16x32xf32> -> vector<16x32xf32>
    %cst_7 = arith.constant 0.000000e+00 : f32
    %6 = vector.broadcast %cst_7 : f32 to vector<1x32xf32>
    %c0_8 = arith.constant 0 : index
    %c0_9 = arith.constant 0 : index
    %7 = vector.load %arg14[%c0_8, %c0_9] : memref<19x32xf32, #tpu.memory_space<vmem>>, vector<1x32xf32>
    tpu.vector_store %arg14[%c0_8, %c0_9], %6 {strides = array<i32>} : memref<19x32xf32, #tpu.memory_space<vmem>>, vector<1x32xf32>,
    %cst_10 = arith.constant 0.000000e+00 : f32
    %8 = vector.broadcast %cst_10 : f32 to vector<2x32xf32>
    %c17 = arith.constant 17 : index
    %c0_11 = arith.constant 0 : index
    %9 = vector.load %arg14[%c17, %c0_11] : memref<19x32xf32, #tpu.memory_space<vmem>>, vector<2x32xf32>
    tpu.vector_store %arg14[%c17, %c0_11], %8 {strides = array<i32>} : memref<19x32xf32, #tpu.memory_space<vmem>>, vector<2x32xf32>,
    %c1 = arith.constant 1 : index
    %c0_12 = arith.constant 0 : index
    %10 = vector.load %arg14[%c1, %c0_12] : memref<19x32xf32, #tpu.memory_space<vmem>>, vector<16x32xf32>
    tpu.vector_store %arg14[%c1, %c0_12], %3 {strides = array<i32>} : memref<19x32xf32, #tpu.memory_space<vmem>>, vector<16x32xf32>,
    %cst_13 = arith.constant 0.000000e+00 : f32
    %11 = vector.broadcast %cst_13 : f32 to vector<16x32xf32>
    %c0_14 = arith.constant 0 : index
    %c0_15 = arith.constant 0 : index
    %12 = vector.load %arg14[%c0_14, %c0_15] : memref<19x32xf32, #tpu.memory_space<vmem>>, vector<16x32xf32>
    %c0_16 = arith.constant 0 : index
    %c0_17 = arith.constant 0 : index
    %13 = vector.load %arg4[%c0_16, %c0_17] : memref<4x32xf32, #tpu.memory_space<vmem>>, vector<1x32xf32>
    %14 = vector.broadcast %13 : vector<1x32xf32> to vector<16x32xf32>
    %15 = arith.mulf %12, %14 : vector<16x32xf32>
    %16 = arith.addf %11, %15 : vector<16x32xf32>
    %c1_18 = arith.constant 1 : index
    %c0_19 = arith.constant 0 : index
    %17 = vector.load %arg14[%c1_18, %c0_19] : memref<19x32xf32, #tpu.memory_space<vmem>>, vector<16x32xf32>
    %c1_20 = arith.constant 1 : index
    %c0_21 = arith.constant 0 : index
    %18 = vector.load %arg4[%c1_20, %c0_21] : memref<4x32xf32, #tpu.memory_space<vmem>>, vector<1x32xf32>
    %19 = vector.broadcast %18 : vector<1x32xf32> to vector<16x32xf32>
    %20 = arith.mulf %17, %19 : vector<16x32xf32>
    %21 = arith.addf %16, %20 : vector<16x32xf32>
    %c2 = arith.constant 2 : index
    %c0_22 = arith.constant 0 : index
    %22 = vector.load %arg14[%c2, %c0_22] : memref<19x32xf32, #tpu.memory_space<vmem>>, vector<16x32xf32>
    %c2_23 = arith.constant 2 : index
    %c0_24 = arith.constant 0 : index
    %23 = vector.load %arg4[%c2_23, %c0_24] : memref<4x32xf32, #tpu.memory_space<vmem>>, vector<1x32xf32>
    %24 = vector.broadcast %23 : vector<1x32xf32> to vector<16x32xf32>
    %25 = arith.mulf %22, %24 : vector<16x32xf32>
    %26 = arith.addf %21, %25 : vector<16x32xf32>
    %c3 = arith.constant 3 : index
    %c0_25 = arith.constant 0 : index
    %27 = vector.load %arg14[%c3, %c0_25] : memref<19x32xf32, #tpu.memory_space<vmem>>, vector<16x32xf32>
    %c3_26 = arith.constant 3 : index
    %c0_27 = arith.constant 0 : index
    %28 = vector.load %arg4[%c3_26, %c0_27] : memref<4x32xf32, #tpu.memory_space<vmem>>, vector<1x32xf32>
    %29 = vector.broadcast %28 : vector<1x32xf32> to vector<16x32xf32>
    %30 = arith.mulf %27, %29 : vector<16x32xf32>
    %31 = arith.addf %26, %30 : vector<16x32xf32>
    %cst_28 = arith.constant 0.000000e+00 : f32
    %32 = vector.broadcast %cst_28 : f32 to vector<16x32xf32>
    %33 = arith.subf %32, %31 : vector<16x32xf32>
    %34 = math.exp %33 : vector<16x32xf32>
    %cst_29 = arith.constant 1.000000e+00 : f32
    %35 = vector.broadcast %cst_29 : f32 to vector<16x32xf32>
    %36 = arith.addf %35, %34 : vector<16x32xf32>
    %37 = tpu.reciprocal %36 {approx = true} : vector<16x32xf32> -> vector<16x32xf32>
    %38 = arith.mulf %31, %37 : vector<16x32xf32>
    %c1_30 = arith.constant 1 : index
    %c0_31 = arith.constant 0 : index
    %39 = vector.load %arg14[%c1_30, %c0_31] : memref<19x32xf32, #tpu.memory_space<vmem>>, vector<16x32xf32>
    tpu.vector_store %arg14[%c1_30, %c0_31], %5 {strides = array<i32>} : memref<19x32xf32, #tpu.memory_space<vmem>>, vector<16x32xf32>,
    %cst_32 = arith.constant 0.000000e+00 : f32
    %40 = vector.broadcast %cst_32 : f32 to vector<16x32xf32>
    %c0_33 = arith.constant 0 : index
    %c0_34 = arith.constant 0 : index
    %41 = vector.load %arg14[%c0_33, %c0_34] : memref<19x32xf32, #tpu.memory_space<vmem>>, vector<16x32xf32>
    %c0_35 = arith.constant 0 : index
    %c0_36 = arith.constant 0 : index
    %42 = vector.load %arg5[%c0_35, %c0_36] : memref<4x32xf32, #tpu.memory_space<vmem>>, vector<1x32xf32>
    %43 = vector.broadcast %42 : vector<1x32xf32> to vector<16x32xf32>
    %44 = arith.mulf %41, %43 : vector<16x32xf32>
    %45 = arith.addf %40, %44 : vector<16x32xf32>
    %c1_37 = arith.constant 1 : index
    %c0_38 = arith.constant 0 : index
    %46 = vector.load %arg14[%c1_37, %c0_38] : memref<19x32xf32, #tpu.memory_space<vmem>>, vector<16x32xf32>
    %c1_39 = arith.constant 1 : index
    %c0_40 = arith.constant 0 : index
    %47 = vector.load %arg5[%c1_39, %c0_40] : memref<4x32xf32, #tpu.memory_space<vmem>>, vector<1x32xf32>
    %48 = vector.broadcast %47 : vector<1x32xf32> to vector<16x32xf32>
    %49 = arith.mulf %46, %48 : vector<16x32xf32>
    %50 = arith.addf %45, %49 : vector<16x32xf32>
    %c2_41 = arith.constant 2 : index
    %c0_42 = arith.constant 0 : index
    %51 = vector.load %arg14[%c2_41, %c0_42] : memref<19x32xf32, #tpu.memory_space<vmem>>, vector<16x32xf32>
    %c2_43 = arith.constant 2 : index
    %c0_44 = arith.constant 0 : index
    %52 = vector.load %arg5[%c2_43, %c0_44] : memref<4x32xf32, #tpu.memory_space<vmem>>, vector<1x32xf32>
    %53 = vector.broadcast %52 : vector<1x32xf32> to vector<16x32xf32>
    %54 = arith.mulf %51, %53 : vector<16x32xf32>
    %55 = arith.addf %50, %54 : vector<16x32xf32>
    %c3_45 = arith.constant 3 : index
    %c0_46 = arith.constant 0 : index
    %56 = vector.load %arg14[%c3_45, %c0_46] : memref<19x32xf32, #tpu.memory_space<vmem>>, vector<16x32xf32>
    %c3_47 = arith.constant 3 : index
    %c0_48 = arith.constant 0 : index
    %57 = vector.load %arg5[%c3_47, %c0_48] : memref<4x32xf32, #tpu.memory_space<vmem>>, vector<1x32xf32>
    %58 = vector.broadcast %57 : vector<1x32xf32> to vector<16x32xf32>
    %59 = arith.mulf %56, %58 : vector<16x32xf32>
    %60 = arith.addf %55, %59 : vector<16x32xf32>
    %cst_49 = arith.constant 0.000000e+00 : f32
    %61 = vector.broadcast %cst_49 : f32 to vector<16x32xf32>
    %62 = arith.subf %61, %60 : vector<16x32xf32>
    %63 = math.exp %62 : vector<16x32xf32>
    %cst_50 = arith.constant 1.000000e+00 : f32
    %64 = vector.broadcast %cst_50 : f32 to vector<16x32xf32>
    %65 = arith.addf %64, %63 : vector<16x32xf32>
    %66 = tpu.reciprocal %65 {approx = true} : vector<16x32xf32> -> vector<16x32xf32>
    %67 = arith.mulf %60, %66 : vector<16x32xf32>
    %68 = arith.truncf %38 : vector<16x32xf32> to vector<16x32xbf16>
    %c0_51 = arith.constant 0 : index
    %c0_52 = arith.constant 0 : index
    %69 = vector.load %arg6[%c0_51, %c0_52] : memref<32x34xbf16, #tpu.memory_space<vmem>>, vector<32x34xbf16>
    %cst_53 = arith.constant dense<0.000000e+00> : vector<16x34xf32>
    %70 = tpu.matmul %68, %69, %cst_53 {dimension_numbers = #tpu.dot_dimension_numbers<[1], [0], [0], [1], [0, 0, 1, 1], [], []>} : vector<16x32xbf16>, vector<32x34xbf16>, vector<16x34xf32> -> vector<16x34xf32>
    %c0_54 = arith.constant 0 : index
    %c0_55 = arith.constant 0 : index
    %71 = vector.load %arg8[%c0_54, %c0_55] : memref<1x32xf32, #tpu.memory_space<vmem>>, vector<1x32xf32>
    %72 = vector.extract_strided_slice %70 {offsets = [0, 0], sizes = [16, 2], strides = [1, 1]} : vector<16x34xf32> to vector<16x2xf32>
    %c0_56 = arith.constant 0 : index
    %c0_57 = arith.constant 0 : index
    %73 = vector.load %arg7[%c0_56, %c0_57] : memref<2x32xf32, #tpu.memory_space<vmem>>, vector<2x32xf32>
    %cst_58 = arith.constant dense<0.000000e+00> : vector<16x32xf32>
    %74 = tpu.matmul %72, %73, %cst_58 {dimension_numbers = #tpu.dot_dimension_numbers<[1], [0], [0], [1], [0, 0, 1, 1], [], []>} : vector<16x2xf32>, vector<2x32xf32>, vector<16x32xf32> -> vector<16x32xf32>
    %75 = vector.broadcast %71 : vector<1x32xf32> to vector<16x32xf32>
    %76 = arith.addf %74, %75 : vector<16x32xf32>
    %77 = vector.broadcast %71 : vector<1x32xf32> to vector<16x32xf32>
    %78 = arith.addf %76, %77 : vector<16x32xf32>
    %cst_59 = arith.constant 0.000000e+00 : f32
    %79 = vector.broadcast %cst_59 : f32 to vector<16x32xf32>
    %80 = arith.maximumf %78, %79 : vector<16x32xf32>
    %81 = math.absf %78 : vector<16x32xf32>
    %cst_60 = arith.constant 0.000000e+00 : f32
    %82 = vector.broadcast %cst_60 : f32 to vector<16x32xf32>
    %83 = arith.subf %82, %81 : vector<16x32xf32>
    %84 = math.exp %83 : vector<16x32xf32>
    %cst_61 = arith.constant 1.000000e+00 : f32
    %85 = vector.broadcast %cst_61 : f32 to vector<16x32xf32>
    %86 = arith.addf %85, %84 : vector<16x32xf32>
    %87 = math.log %86 : vector<16x32xf32>
    %88 = arith.addf %80, %87 : vector<16x32xf32>
    %89 = arith.mulf %88, %38 : vector<16x32xf32>
    %c0_62 = arith.constant 0 : index
    %c0_63 = arith.constant 0 : index
    %90 = vector.load %arg9[%c0_62, %c0_63] : memref<16x32xf32, #tpu.memory_space<vmem>>, vector<1x32xf32>
    %91 = vector.extract_strided_slice %70 {offsets = [0, 2], sizes = [16, 1], strides = [1, 1]} : vector<16x34xf32> to vector<16x1xf32>
    %92 = vector.broadcast %90 : vector<1x32xf32> to vector<16x32xf32>
    %93 = arith.mulf %88, %92 : vector<16x32xf32>
    %94 = math.exp %93 : vector<16x32xf32>
    %c0_64 = arith.constant 0 : index
    %c0_65 = arith.constant 0 : index
    %95 = vector.load %arg15[%c0_64, %c0_65] : memref<16x512xf32, #tpu.memory_space<vmem>>, vector<16x32xf32>
    tpu.vector_store %arg15[%c0_64, %c0_65], %94 {strides = array<i32>} : memref<16x512xf32, #tpu.memory_space<vmem>>, vector<16x32xf32>,
    %96 = vector.broadcast %91 : vector<16x1xf32> to vector<16x32xf32>
    %97 = arith.mulf %89, %96 : vector<16x32xf32>
    %c0_66 = arith.constant 0 : index
    %c0_67 = arith.constant 0 : index
    %98 = vector.load %arg16[%c0_66, %c0_67] : memref<16x512xf32, #tpu.memory_space<vmem>>, vector<16x32xf32>
    tpu.vector_store %arg16[%c0_66, %c0_67], %97 {strides = array<i32>} : memref<16x512xf32, #tpu.memory_space<vmem>>, vector<16x32xf32>,
    %c1_68 = arith.constant 1 : index
    %c0_69 = arith.constant 0 : index
    %99 = vector.load %arg9[%c1_68, %c0_69] : memref<16x32xf32, #tpu.memory_space<vmem>>, vector<1x32xf32>
    %100 = vector.extract_strided_slice %70 {offsets = [0, 3], sizes = [16, 1], strides = [1, 1]} : vector<16x34xf32> to vector<16x1xf32>
    %101 = vector.broadcast %99 : vector<1x32xf32> to vector<16x32xf32>
    %102 = arith.mulf %88, %101 : vector<16x32xf32>
    %103 = math.exp %102 : vector<16x32xf32>
    %c0_70 = arith.constant 0 : index
    %c32 = arith.constant 32 : index
    %104 = vector.load %arg15[%c0_70, %c32] : memref<16x512xf32, #tpu.memory_space<vmem>>, vector<16x32xf32>
    tpu.vector_store %arg15[%c0_70, %c32], %103 {strides = array<i32>} : memref<16x512xf32, #tpu.memory_space<vmem>>, vector<16x32xf32>,
    %105 = vector.broadcast %100 : vector<16x1xf32> to vector<16x32xf32>
    %106 = arith.mulf %89, %105 : vector<16x32xf32>
    %c0_71 = arith.constant 0 : index
    %c32_72 = arith.constant 32 : index
    %107 = vector.load %arg16[%c0_71, %c32_72] : memref<16x512xf32, #tpu.memory_space<vmem>>, vector<16x32xf32>
    tpu.vector_store %arg16[%c0_71, %c32_72], %106 {strides = array<i32>} : memref<16x512xf32, #tpu.memory_space<vmem>>, vector<16x32xf32>,
    %c2_73 = arith.constant 2 : index
    %c0_74 = arith.constant 0 : index
    %108 = vector.load %arg9[%c2_73, %c0_74] : memref<16x32xf32, #tpu.memory_space<vmem>>, vector<1x32xf32>
    %109 = vector.extract_strided_slice %70 {offsets = [0, 4], sizes = [16, 1], strides = [1, 1]} : vector<16x34xf32> to vector<16x1xf32>
    %110 = vector.broadcast %108 : vector<1x32xf32> to vector<16x32xf32>
    %111 = arith.mulf %88, %110 : vector<16x32xf32>
    %112 = math.exp %111 : vector<16x32xf32>
    %c0_75 = arith.constant 0 : index
    %c64 = arith.constant 64 : index
    %113 = vector.load %arg15[%c0_75, %c64] : memref<16x512xf32, #tpu.memory_space<vmem>>, vector<16x32xf32>
    tpu.vector_store %arg15[%c0_75, %c64], %112 {strides = array<i32>} : memref<16x512xf32, #tpu.memory_space<vmem>>, vector<16x32xf32>,
    %114 = vector.broadcast %109 : vector<16x1xf32> to vector<16x32xf32>
    %115 = arith.mulf %89, %114 : vector<16x32xf32>
    %c0_76 = arith.constant 0 : index
    %c64_77 = arith.constant 64 : index
    %116 = vector.load %arg16[%c0_76, %c64_77] : memref<16x512xf32, #tpu.memory_space<vmem>>, vector<16x32xf32>
    tpu.vector_store %arg16[%c0_76, %c64_77], %115 {strides = array<i32>} : memref<16x512xf32, #tpu.memory_space<vmem>>, vector<16x32xf32>,
    %c3_78 = arith.constant 3 : index
    %c0_79 = arith.constant 0 : index
    %117 = vector.load %arg9[%c3_78, %c0_79] : memref<16x32xf32, #tpu.memory_space<vmem>>, vector<1x32xf32>
    %118 = vector.extract_strided_slice %70 {offsets = [0, 5], sizes = [16, 1], strides = [1, 1]} : vector<16x34xf32> to vector<16x1xf32>
    %119 = vector.broadcast %117 : vector<1x32xf32> to vector<16x32xf32>
    %120 = arith.mulf %88, %119 : vector<16x32xf32>
    %121 = math.exp %120 : vector<16x32xf32>
    %c0_80 = arith.constant 0 : index
    %c96 = arith.constant 96 : index
    %122 = vector.load %arg15[%c0_80, %c96] : memref<16x512xf32, #tpu.memory_space<vmem>>, vector<16x32xf32>
    tpu.vector_store %arg15[%c0_80, %c96], %121 {strides = array<i32>} : memref<16x512xf32, #tpu.memory_space<vmem>>, vector<16x32xf32>,
    %123 = vector.broadcast %118 : vector<16x1xf32> to vector<16x32xf32>
    %124 = arith.mulf %89, %123 : vector<16x32xf32>
    %c0_81 = arith.constant 0 : index
    %c96_82 = arith.constant 96 : index
    %125 = vector.load %arg16[%c0_81, %c96_82] : memref<16x512xf32, #tpu.memory_space<vmem>>, vector<16x32xf32>
    tpu.vector_store %arg16[%c0_81, %c96_82], %124 {strides = array<i32>} : memref<16x512xf32, #tpu.memory_space<vmem>>, vector<16x32xf32>,
    %c4 = arith.constant 4 : index
    %c0_83 = arith.constant 0 : index
    %126 = vector.load %arg9[%c4, %c0_83] : memref<16x32xf32, #tpu.memory_space<vmem>>, vector<1x32xf32>
    %127 = vector.extract_strided_slice %70 {offsets = [0, 6], sizes = [16, 1], strides = [1, 1]} : vector<16x34xf32> to vector<16x1xf32>
    %128 = vector.broadcast %126 : vector<1x32xf32> to vector<16x32xf32>
    %129 = arith.mulf %88, %128 : vector<16x32xf32>
    %130 = math.exp %129 : vector<16x32xf32>
    %c0_84 = arith.constant 0 : index
    %c128 = arith.constant 128 : index
    %131 = vector.load %arg15[%c0_84, %c128] : memref<16x512xf32, #tpu.memory_space<vmem>>, vector<16x32xf32>
    tpu.vector_store %arg15[%c0_84, %c128], %130 {strides = array<i32>} : memref<16x512xf32, #tpu.memory_space<vmem>>, vector<16x32xf32>,
    %132 = vector.broadcast %127 : vector<16x1xf32> to vector<16x32xf32>
    %133 = arith.mulf %89, %132 : vector<16x32xf32>
    %c0_85 = arith.constant 0 : index
    %c128_86 = arith.constant 128 : index
    %134 = vector.load %arg16[%c0_85, %c128_86] : memref<16x512xf32, #tpu.memory_space<vmem>>, vector<16x32xf32>
    tpu.vector_store %arg16[%c0_85, %c128_86], %133 {strides = array<i32>} : memref<16x512xf32, #tpu.memory_space<vmem>>, vector<16x32xf32>,
    %c5 = arith.constant 5 : index
    %c0_87 = arith.constant 0 : index
    %135 = vector.load %arg9[%c5, %c0_87] : memref<16x32xf32, #tpu.memory_space<vmem>>, vector<1x32xf32>
    %136 = vector.extract_strided_slice %70 {offsets = [0, 7], sizes = [16, 1], strides = [1, 1]} : vector<16x34xf32> to vector<16x1xf32>
    %137 = vector.broadcast %135 : vector<1x32xf32> to vector<16x32xf32>
    %138 = arith.mulf %88, %137 : vector<16x32xf32>
    %139 = math.exp %138 : vector<16x32xf32>
    %c0_88 = arith.constant 0 : index
    %c160 = arith.constant 160 : index
    %140 = vector.load %arg15[%c0_88, %c160] : memref<16x512xf32, #tpu.memory_space<vmem>>, vector<16x32xf32>
    tpu.vector_store %arg15[%c0_88, %c160], %139 {strides = array<i32>} : memref<16x512xf32, #tpu.memory_space<vmem>>, vector<16x32xf32>,
    %141 = vector.broadcast %136 : vector<16x1xf32> to vector<16x32xf32>
    %142 = arith.mulf %89, %141 : vector<16x32xf32>
    %c0_89 = arith.constant 0 : index
    %c160_90 = arith.constant 160 : index
    %143 = vector.load %arg16[%c0_89, %c160_90] : memref<16x512xf32, #tpu.memory_space<vmem>>, vector<16x32xf32>
    tpu.vector_store %arg16[%c0_89, %c160_90], %142 {strides = array<i32>} : memref<16x512xf32, #tpu.memory_space<vmem>>, vector<16x32xf32>,
    %c6 = arith.constant 6 : index
    %c0_91 = arith.constant 0 : index
    %144 = vector.load %arg9[%c6, %c0_91] : memref<16x32xf32, #tpu.memory_space<vmem>>, vector<1x32xf32>
    %145 = vector.extract_strided_slice %70 {offsets = [0, 8], sizes = [16, 1], strides = [1, 1]} : vector<16x34xf32> to vector<16x1xf32>
    %146 = vector.broadcast %144 : vector<1x32xf32> to vector<16x32xf32>
    %147 = arith.mulf %88, %146 : vector<16x32xf32>
    %148 = math.exp %147 : vector<16x32xf32>
    %c0_92 = arith.constant 0 : index
    %c192 = arith.constant 192 : index
    %149 = vector.load %arg15[%c0_92, %c192] : memref<16x512xf32, #tpu.memory_space<vmem>>, vector<16x32xf32>
    tpu.vector_store %arg15[%c0_92, %c192], %148 {strides = array<i32>} : memref<16x512xf32, #tpu.memory_space<vmem>>, vector<16x32xf32>,
    %150 = vector.broadcast %145 : vector<16x1xf32> to vector<16x32xf32>
    %151 = arith.mulf %89, %150 : vector<16x32xf32>
    %c0_93 = arith.constant 0 : index
    %c192_94 = arith.constant 192 : index
    %152 = vector.load %arg16[%c0_93, %c192_94] : memref<16x512xf32, #tpu.memory_space<vmem>>, vector<16x32xf32>
    tpu.vector_store %arg16[%c0_93, %c192_94], %151 {strides = array<i32>} : memref<16x512xf32, #tpu.memory_space<vmem>>, vector<16x32xf32>,
    %c7 = arith.constant 7 : index
    %c0_95 = arith.constant 0 : index
    %153 = vector.load %arg9[%c7, %c0_95] : memref<16x32xf32, #tpu.memory_space<vmem>>, vector<1x32xf32>
    %154 = vector.extract_strided_slice %70 {offsets = [0, 9], sizes = [16, 1], strides = [1, 1]} : vector<16x34xf32> to vector<16x1xf32>
    %155 = vector.broadcast %153 : vector<1x32xf32> to vector<16x32xf32>
    %156 = arith.mulf %88, %155 : vector<16x32xf32>
    %157 = math.exp %156 : vector<16x32xf32>
    %c0_96 = arith.constant 0 : index
    %c224 = arith.constant 224 : index
    %158 = vector.load %arg15[%c0_96, %c224] : memref<16x512xf32, #tpu.memory_space<vmem>>, vector<16x32xf32>
    tpu.vector_store %arg15[%c0_96, %c224], %157 {strides = array<i32>} : memref<16x512xf32, #tpu.memory_space<vmem>>, vector<16x32xf32>,
    %159 = vector.broadcast %154 : vector<16x1xf32> to vector<16x32xf32>
    %160 = arith.mulf %89, %159 : vector<16x32xf32>
    %c0_97 = arith.constant 0 : index
    %c224_98 = arith.constant 224 : index
    %161 = vector.load %arg16[%c0_97, %c224_98] : memref<16x512xf32, #tpu.memory_space<vmem>>, vector<16x32xf32>
    tpu.vector_store %arg16[%c0_97, %c224_98], %160 {strides = array<i32>} : memref<16x512xf32, #tpu.memory_space<vmem>>, vector<16x32xf32>,
    %c8 = arith.constant 8 : index
    %c0_99 = arith.constant 0 : index
    %162 = vector.load %arg9[%c8, %c0_99] : memref<16x32xf32, #tpu.memory_space<vmem>>, vector<1x32xf32>
    %163 = vector.extract_strided_slice %70 {offsets = [0, 10], sizes = [16, 1], strides = [1, 1]} : vector<16x34xf32> to vector<16x1xf32>
    %164 = vector.broadcast %162 : vector<1x32xf32> to vector<16x32xf32>
    %165 = arith.mulf %88, %164 : vector<16x32xf32>
    %166 = math.exp %165 : vector<16x32xf32>
    %c0_100 = arith.constant 0 : index
    %c256 = arith.constant 256 : index
    %167 = vector.load %arg15[%c0_100, %c256] : memref<16x512xf32, #tpu.memory_space<vmem>>, vector<16x32xf32>
    tpu.vector_store %arg15[%c0_100, %c256], %166 {strides = array<i32>} : memref<16x512xf32, #tpu.memory_space<vmem>>, vector<16x32xf32>,
    %168 = vector.broadcast %163 : vector<16x1xf32> to vector<16x32xf32>
    %169 = arith.mulf %89, %168 : vector<16x32xf32>
    %c0_101 = arith.constant 0 : index
    %c256_102 = arith.constant 256 : index
    %170 = vector.load %arg16[%c0_101, %c256_102] : memref<16x512xf32, #tpu.memory_space<vmem>>, vector<16x32xf32>
    tpu.vector_store %arg16[%c0_101, %c256_102], %169 {strides = array<i32>} : memref<16x512xf32, #tpu.memory_space<vmem>>, vector<16x32xf32>,
    %c9 = arith.constant 9 : index
    %c0_103 = arith.constant 0 : index
    %171 = vector.load %arg9[%c9, %c0_103] : memref<16x32xf32, #tpu.memory_space<vmem>>, vector<1x32xf32>
    %172 = vector.extract_strided_slice %70 {offsets = [0, 11], sizes = [16, 1], strides = [1, 1]} : vector<16x34xf32> to vector<16x1xf32>
    %173 = vector.broadcast %171 : vector<1x32xf32> to vector<16x32xf32>
    %174 = arith.mulf %88, %173 : vector<16x32xf32>
    %175 = math.exp %174 : vector<16x32xf32>
    %c0_104 = arith.constant 0 : index
    %c288 = arith.constant 288 : index
    %176 = vector.load %arg15[%c0_104, %c288] : memref<16x512xf32, #tpu.memory_space<vmem>>, vector<16x32xf32>
    tpu.vector_store %arg15[%c0_104, %c288], %175 {strides = array<i32>} : memref<16x512xf32, #tpu.memory_space<vmem>>, vector<16x32xf32>,
    %177 = vector.broadcast %172 : vector<16x1xf32> to vector<16x32xf32>
    %178 = arith.mulf %89, %177 : vector<16x32xf32>
    %c0_105 = arith.constant 0 : index
    %c288_106 = arith.constant 288 : index
    %179 = vector.load %arg16[%c0_105, %c288_106] : memref<16x512xf32, #tpu.memory_space<vmem>>, vector<16x32xf32>
    tpu.vector_store %arg16[%c0_105, %c288_106], %178 {strides = array<i32>} : memref<16x512xf32, #tpu.memory_space<vmem>>, vector<16x32xf32>,
    %c10 = arith.constant 10 : index
    %c0_107 = arith.constant 0 : index
    %180 = vector.load %arg9[%c10, %c0_107] : memref<16x32xf32, #tpu.memory_space<vmem>>, vector<1x32xf32>
    %181 = vector.extract_strided_slice %70 {offsets = [0, 12], sizes = [16, 1], strides = [1, 1]} : vector<16x34xf32> to vector<16x1xf32>
    %182 = vector.broadcast %180 : vector<1x32xf32> to vector<16x32xf32>
    %183 = arith.mulf %88, %182 : vector<16x32xf32>
    %184 = math.exp %183 : vector<16x32xf32>
    %c0_108 = arith.constant 0 : index
    %c320 = arith.constant 320 : index
    %185 = vector.load %arg15[%c0_108, %c320] : memref<16x512xf32, #tpu.memory_space<vmem>>, vector<16x32xf32>
    tpu.vector_store %arg15[%c0_108, %c320], %184 {strides = array<i32>} : memref<16x512xf32, #tpu.memory_space<vmem>>, vector<16x32xf32>,
    %186 = vector.broadcast %181 : vector<16x1xf32> to vector<16x32xf32>
    %187 = arith.mulf %89, %186 : vector<16x32xf32>
    %c0_109 = arith.constant 0 : index
    %c320_110 = arith.constant 320 : index
    %188 = vector.load %arg16[%c0_109, %c320_110] : memref<16x512xf32, #tpu.memory_space<vmem>>, vector<16x32xf32>
    tpu.vector_store %arg16[%c0_109, %c320_110], %187 {strides = array<i32>} : memref<16x512xf32, #tpu.memory_space<vmem>>, vector<16x32xf32>,
    %c11 = arith.constant 11 : index
    %c0_111 = arith.constant 0 : index
    %189 = vector.load %arg9[%c11, %c0_111] : memref<16x32xf32, #tpu.memory_space<vmem>>, vector<1x32xf32>
    %190 = vector.extract_strided_slice %70 {offsets = [0, 13], sizes = [16, 1], strides = [1, 1]} : vector<16x34xf32> to vector<16x1xf32>
    %191 = vector.broadcast %189 : vector<1x32xf32> to vector<16x32xf32>
    %192 = arith.mulf %88, %191 : vector<16x32xf32>
    %193 = math.exp %192 : vector<16x32xf32>
    %c0_112 = arith.constant 0 : index
    %c352 = arith.constant 352 : index
    %194 = vector.load %arg15[%c0_112, %c352] : memref<16x512xf32, #tpu.memory_space<vmem>>, vector<16x32xf32>
    tpu.vector_store %arg15[%c0_112, %c352], %193 {strides = array<i32>} : memref<16x512xf32, #tpu.memory_space<vmem>>, vector<16x32xf32>,
    %195 = vector.broadcast %190 : vector<16x1xf32> to vector<16x32xf32>
    %196 = arith.mulf %89, %195 : vector<16x32xf32>
    %c0_113 = arith.constant 0 : index
    %c352_114 = arith.constant 352 : index
    %197 = vector.load %arg16[%c0_113, %c352_114] : memref<16x512xf32, #tpu.memory_space<vmem>>, vector<16x32xf32>
    tpu.vector_store %arg16[%c0_113, %c352_114], %196 {strides = array<i32>} : memref<16x512xf32, #tpu.memory_space<vmem>>, vector<16x32xf32>,
    %c12 = arith.constant 12 : index
    %c0_115 = arith.constant 0 : index
    %198 = vector.load %arg9[%c12, %c0_115] : memref<16x32xf32, #tpu.memory_space<vmem>>, vector<1x32xf32>
    %199 = vector.extract_strided_slice %70 {offsets = [0, 14], sizes = [16, 1], strides = [1, 1]} : vector<16x34xf32> to vector<16x1xf32>
    %200 = vector.broadcast %198 : vector<1x32xf32> to vector<16x32xf32>
    %201 = arith.mulf %88, %200 : vector<16x32xf32>
    %202 = math.exp %201 : vector<16x32xf32>
    %c0_116 = arith.constant 0 : index
    %c384 = arith.constant 384 : index
    %203 = vector.load %arg15[%c0_116, %c384] : memref<16x512xf32, #tpu.memory_space<vmem>>, vector<16x32xf32>
    tpu.vector_store %arg15[%c0_116, %c384], %202 {strides = array<i32>} : memref<16x512xf32, #tpu.memory_space<vmem>>, vector<16x32xf32>,
    %204 = vector.broadcast %199 : vector<16x1xf32> to vector<16x32xf32>
    %205 = arith.mulf %89, %204 : vector<16x32xf32>
    %c0_117 = arith.constant 0 : index
    %c384_118 = arith.constant 384 : index
    %206 = vector.load %arg16[%c0_117, %c384_118] : memref<16x512xf32, #tpu.memory_space<vmem>>, vector<16x32xf32>
    tpu.vector_store %arg16[%c0_117, %c384_118], %205 {strides = array<i32>} : memref<16x512xf32, #tpu.memory_space<vmem>>, vector<16x32xf32>,
    %c13 = arith.constant 13 : index
    %c0_119 = arith.constant 0 : index
    %207 = vector.load %arg9[%c13, %c0_119] : memref<16x32xf32, #tpu.memory_space<vmem>>, vector<1x32xf32>
    %208 = vector.extract_strided_slice %70 {offsets = [0, 15], sizes = [16, 1], strides = [1, 1]} : vector<16x34xf32> to vector<16x1xf32>
    %209 = vector.broadcast %207 : vector<1x32xf32> to vector<16x32xf32>
    %210 = arith.mulf %88, %209 : vector<16x32xf32>
    %211 = math.exp %210 : vector<16x32xf32>
    %c0_120 = arith.constant 0 : index
    %c416 = arith.constant 416 : index
    %212 = vector.load %arg15[%c0_120, %c416] : memref<16x512xf32, #tpu.memory_space<vmem>>, vector<16x32xf32>
    tpu.vector_store %arg15[%c0_120, %c416], %211 {strides = array<i32>} : memref<16x512xf32, #tpu.memory_space<vmem>>, vector<16x32xf32>,
    %213 = vector.broadcast %208 : vector<16x1xf32> to vector<16x32xf32>
    %214 = arith.mulf %89, %213 : vector<16x32xf32>
    %c0_121 = arith.constant 0 : index
    %c416_122 = arith.constant 416 : index
    %215 = vector.load %arg16[%c0_121, %c416_122] : memref<16x512xf32, #tpu.memory_space<vmem>>, vector<16x32xf32>
    tpu.vector_store %arg16[%c0_121, %c416_122], %214 {strides = array<i32>} : memref<16x512xf32, #tpu.memory_space<vmem>>, vector<16x32xf32>,
    %c14 = arith.constant 14 : index
    %c0_123 = arith.constant 0 : index
    %216 = vector.load %arg9[%c14, %c0_123] : memref<16x32xf32, #tpu.memory_space<vmem>>, vector<1x32xf32>
    %217 = vector.extract_strided_slice %70 {offsets = [0, 16], sizes = [16, 1], strides = [1, 1]} : vector<16x34xf32> to vector<16x1xf32>
    %218 = vector.broadcast %216 : vector<1x32xf32> to vector<16x32xf32>
    %219 = arith.mulf %88, %218 : vector<16x32xf32>
    %220 = math.exp %219 : vector<16x32xf32>
    %c0_124 = arith.constant 0 : index
    %c448 = arith.constant 448 : index
    %221 = vector.load %arg15[%c0_124, %c448] : memref<16x512xf32, #tpu.memory_space<vmem>>, vector<16x32xf32>
    tpu.vector_store %arg15[%c0_124, %c448], %220 {strides = array<i32>} : memref<16x512xf32, #tpu.memory_space<vmem>>, vector<16x32xf32>,
    %222 = vector.broadcast %217 : vector<16x1xf32> to vector<16x32xf32>
    %223 = arith.mulf %89, %222 : vector<16x32xf32>
    %c0_125 = arith.constant 0 : index
    %c448_126 = arith.constant 448 : index
    %224 = vector.load %arg16[%c0_125, %c448_126] : memref<16x512xf32, #tpu.memory_space<vmem>>, vector<16x32xf32>
    tpu.vector_store %arg16[%c0_125, %c448_126], %223 {strides = array<i32>} : memref<16x512xf32, #tpu.memory_space<vmem>>, vector<16x32xf32>,
    %c15 = arith.constant 15 : index
    %c0_127 = arith.constant 0 : index
    %225 = vector.load %arg9[%c15, %c0_127] : memref<16x32xf32, #tpu.memory_space<vmem>>, vector<1x32xf32>
    %226 = vector.extract_strided_slice %70 {offsets = [0, 17], sizes = [16, 1], strides = [1, 1]} : vector<16x34xf32> to vector<16x1xf32>
    %227 = vector.broadcast %225 : vector<1x32xf32> to vector<16x32xf32>
    %228 = arith.mulf %88, %227 : vector<16x32xf32>
    %229 = math.exp %228 : vector<16x32xf32>
    %c0_128 = arith.constant 0 : index
    %c480 = arith.constant 480 : index
    %230 = vector.load %arg15[%c0_128, %c480] : memref<16x512xf32, #tpu.memory_space<vmem>>, vector<16x32xf32>
    tpu.vector_store %arg15[%c0_128, %c480], %229 {strides = array<i32>} : memref<16x512xf32, #tpu.memory_space<vmem>>, vector<16x32xf32>,
    %231 = vector.broadcast %226 : vector<16x1xf32> to vector<16x32xf32>
    %232 = arith.mulf %89, %231 : vector<16x32xf32>
    %c0_129 = arith.constant 0 : index
    %c480_130 = arith.constant 480 : index
    %233 = vector.load %arg16[%c0_129, %c480_130] : memref<16x512xf32, #tpu.memory_space<vmem>>, vector<16x32xf32>
    tpu.vector_store %arg16[%c0_129, %c480_130], %232 {strides = array<i32>} : memref<16x512xf32, #tpu.memory_space<vmem>>, vector<16x32xf32>,
    %cst_131 = arith.constant 0.000000e+00 : f32
    %234 = vector.broadcast %cst_131 : f32 to vector<1x512xf32>
    %c0_132 = arith.constant 0 : index
    %c0_133 = arith.constant 0 : index
    %235 = vector.load %arg15[%c0_132, %c0_133] : memref<16x512xf32, #tpu.memory_space<vmem>>, vector<1x512xf32>
    %236 = arith.mulf %235, %234 : vector<1x512xf32>
    %c0_134 = arith.constant 0 : index
    %c0_135 = arith.constant 0 : index
    %237 = vector.load %arg16[%c0_134, %c0_135] : memref<16x512xf32, #tpu.memory_space<vmem>>, vector<1x512xf32>
    %238 = arith.addf %236, %237 : vector<1x512xf32>
    %c0_136 = arith.constant 0 : index
    %c0_137 = arith.constant 0 : index
    %239 = vector.load %arg16[%c0_136, %c0_137] : memref<16x512xf32, #tpu.memory_space<vmem>>, vector<1x512xf32>
    tpu.vector_store %arg16[%c0_136, %c0_137], %238 {strides = array<i32>} : memref<16x512xf32, #tpu.memory_space<vmem>>, vector<1x512xf32>,
    %c1_138 = arith.constant 1 : index
    %c0_139 = arith.constant 0 : index
    %240 = vector.load %arg15[%c1_138, %c0_139] : memref<16x512xf32, #tpu.memory_space<vmem>>, vector<1x512xf32>
    %241 = arith.mulf %240, %238 : vector<1x512xf32>
    %c1_140 = arith.constant 1 : index
    %c0_141 = arith.constant 0 : index
    %242 = vector.load %arg16[%c1_140, %c0_141] : memref<16x512xf32, #tpu.memory_space<vmem>>, vector<1x512xf32>
    %243 = arith.addf %241, %242 : vector<1x512xf32>
    %c1_142 = arith.constant 1 : index
    %c0_143 = arith.constant 0 : index
    %244 = vector.load %arg16[%c1_142, %c0_143] : memref<16x512xf32, #tpu.memory_space<vmem>>, vector<1x512xf32>
    tpu.vector_store %arg16[%c1_142, %c0_143], %243 {strides = array<i32>} : memref<16x512xf32, #tpu.memory_space<vmem>>, vector<1x512xf32>,
    %c2_144 = arith.constant 2 : index
    %c0_145 = arith.constant 0 : index
    %245 = vector.load %arg15[%c2_144, %c0_145] : memref<16x512xf32, #tpu.memory_space<vmem>>, vector<1x512xf32>
    %246 = arith.mulf %245, %243 : vector<1x512xf32>
    %c2_146 = arith.constant 2 : index
    %c0_147 = arith.constant 0 : index
    %247 = vector.load %arg16[%c2_146, %c0_147] : memref<16x512xf32, #tpu.memory_space<vmem>>, vector<1x512xf32>
    %248 = arith.addf %246, %247 : vector<1x512xf32>
    %c2_148 = arith.constant 2 : index
    %c0_149 = arith.constant 0 : index
    %249 = vector.load %arg16[%c2_148, %c0_149] : memref<16x512xf32, #tpu.memory_space<vmem>>, vector<1x512xf32>
    tpu.vector_store %arg16[%c2_148, %c0_149], %248 {strides = array<i32>} : memref<16x512xf32, #tpu.memory_space<vmem>>, vector<1x512xf32>,
    %c3_150 = arith.constant 3 : index
    %c0_151 = arith.constant 0 : index
    %250 = vector.load %arg15[%c3_150, %c0_151] : memref<16x512xf32, #tpu.memory_space<vmem>>, vector<1x512xf32>
    %251 = arith.mulf %250, %248 : vector<1x512xf32>
    %c3_152 = arith.constant 3 : index
    %c0_153 = arith.constant 0 : index
    %252 = vector.load %arg16[%c3_152, %c0_153] : memref<16x512xf32, #tpu.memory_space<vmem>>, vector<1x512xf32>
    %253 = arith.addf %251, %252 : vector<1x512xf32>
    %c3_154 = arith.constant 3 : index
    %c0_155 = arith.constant 0 : index
    %254 = vector.load %arg16[%c3_154, %c0_155] : memref<16x512xf32, #tpu.memory_space<vmem>>, vector<1x512xf32>
    tpu.vector_store %arg16[%c3_154, %c0_155], %253 {strides = array<i32>} : memref<16x512xf32, #tpu.memory_space<vmem>>, vector<1x512xf32>,
    %c4_156 = arith.constant 4 : index
    %c0_157 = arith.constant 0 : index
    %255 = vector.load %arg15[%c4_156, %c0_157] : memref<16x512xf32, #tpu.memory_space<vmem>>, vector<1x512xf32>
    %256 = arith.mulf %255, %253 : vector<1x512xf32>
    %c4_158 = arith.constant 4 : index
    %c0_159 = arith.constant 0 : index
    %257 = vector.load %arg16[%c4_158, %c0_159] : memref<16x512xf32, #tpu.memory_space<vmem>>, vector<1x512xf32>
    %258 = arith.addf %256, %257 : vector<1x512xf32>
    %c4_160 = arith.constant 4 : index
    %c0_161 = arith.constant 0 : index
    %259 = vector.load %arg16[%c4_160, %c0_161] : memref<16x512xf32, #tpu.memory_space<vmem>>, vector<1x512xf32>
    tpu.vector_store %arg16[%c4_160, %c0_161], %258 {strides = array<i32>} : memref<16x512xf32, #tpu.memory_space<vmem>>, vector<1x512xf32>,
    %c5_162 = arith.constant 5 : index
    %c0_163 = arith.constant 0 : index
    %260 = vector.load %arg15[%c5_162, %c0_163] : memref<16x512xf32, #tpu.memory_space<vmem>>, vector<1x512xf32>
    %261 = arith.mulf %260, %258 : vector<1x512xf32>
    %c5_164 = arith.constant 5 : index
    %c0_165 = arith.constant 0 : index
    %262 = vector.load %arg16[%c5_164, %c0_165] : memref<16x512xf32, #tpu.memory_space<vmem>>, vector<1x512xf32>
    %263 = arith.addf %261, %262 : vector<1x512xf32>
    %c5_166 = arith.constant 5 : index
    %c0_167 = arith.constant 0 : index
    %264 = vector.load %arg16[%c5_166, %c0_167] : memref<16x512xf32, #tpu.memory_space<vmem>>, vector<1x512xf32>
    tpu.vector_store %arg16[%c5_166, %c0_167], %263 {strides = array<i32>} : memref<16x512xf32, #tpu.memory_space<vmem>>, vector<1x512xf32>,
    %c6_168 = arith.constant 6 : index
    %c0_169 = arith.constant 0 : index
    %265 = vector.load %arg15[%c6_168, %c0_169] : memref<16x512xf32, #tpu.memory_space<vmem>>, vector<1x512xf32>
    %266 = arith.mulf %265, %263 : vector<1x512xf32>
    %c6_170 = arith.constant 6 : index
    %c0_171 = arith.constant 0 : index
    %267 = vector.load %arg16[%c6_170, %c0_171] : memref<16x512xf32, #tpu.memory_space<vmem>>, vector<1x512xf32>
    %268 = arith.addf %266, %267 : vector<1x512xf32>
    %c6_172 = arith.constant 6 : index
    %c0_173 = arith.constant 0 : index
    %269 = vector.load %arg16[%c6_172, %c0_173] : memref<16x512xf32, #tpu.memory_space<vmem>>, vector<1x512xf32>
    tpu.vector_store %arg16[%c6_172, %c0_173], %268 {strides = array<i32>} : memref<16x512xf32, #tpu.memory_space<vmem>>, vector<1x512xf32>,
    %c7_174 = arith.constant 7 : index
    %c0_175 = arith.constant 0 : index
    %270 = vector.load %arg15[%c7_174, %c0_175] : memref<16x512xf32, #tpu.memory_space<vmem>>, vector<1x512xf32>
    %271 = arith.mulf %270, %268 : vector<1x512xf32>
    %c7_176 = arith.constant 7 : index
    %c0_177 = arith.constant 0 : index
    %272 = vector.load %arg16[%c7_176, %c0_177] : memref<16x512xf32, #tpu.memory_space<vmem>>, vector<1x512xf32>
    %273 = arith.addf %271, %272 : vector<1x512xf32>
    %c7_178 = arith.constant 7 : index
    %c0_179 = arith.constant 0 : index
    %274 = vector.load %arg16[%c7_178, %c0_179] : memref<16x512xf32, #tpu.memory_space<vmem>>, vector<1x512xf32>
    tpu.vector_store %arg16[%c7_178, %c0_179], %273 {strides = array<i32>} : memref<16x512xf32, #tpu.memory_space<vmem>>, vector<1x512xf32>,
    %c8_180 = arith.constant 8 : index
    %c0_181 = arith.constant 0 : index
    %275 = vector.load %arg15[%c8_180, %c0_181] : memref<16x512xf32, #tpu.memory_space<vmem>>, vector<1x512xf32>
    %276 = arith.mulf %275, %273 : vector<1x512xf32>
    %c8_182 = arith.constant 8 : index
    %c0_183 = arith.constant 0 : index
    %277 = vector.load %arg16[%c8_182, %c0_183] : memref<16x512xf32, #tpu.memory_space<vmem>>, vector<1x512xf32>
    %278 = arith.addf %276, %277 : vector<1x512xf32>
    %c8_184 = arith.constant 8 : index
    %c0_185 = arith.constant 0 : index
    %279 = vector.load %arg16[%c8_184, %c0_185] : memref<16x512xf32, #tpu.memory_space<vmem>>, vector<1x512xf32>
    tpu.vector_store %arg16[%c8_184, %c0_185], %278 {strides = array<i32>} : memref<16x512xf32, #tpu.memory_space<vmem>>, vector<1x512xf32>,
    %c9_186 = arith.constant 9 : index
    %c0_187 = arith.constant 0 : index
    %280 = vector.load %arg15[%c9_186, %c0_187] : memref<16x512xf32, #tpu.memory_space<vmem>>, vector<1x512xf32>
    %281 = arith.mulf %280, %278 : vector<1x512xf32>
    %c9_188 = arith.constant 9 : index
    %c0_189 = arith.constant 0 : index
    %282 = vector.load %arg16[%c9_188, %c0_189] : memref<16x512xf32, #tpu.memory_space<vmem>>, vector<1x512xf32>
    %283 = arith.addf %281, %282 : vector<1x512xf32>
    %c9_190 = arith.constant 9 : index
    %c0_191 = arith.constant 0 : index
    %284 = vector.load %arg16[%c9_190, %c0_191] : memref<16x512xf32, #tpu.memory_space<vmem>>, vector<1x512xf32>
    tpu.vector_store %arg16[%c9_190, %c0_191], %283 {strides = array<i32>} : memref<16x512xf32, #tpu.memory_space<vmem>>, vector<1x512xf32>,
    %c10_192 = arith.constant 10 : index
    %c0_193 = arith.constant 0 : index
    %285 = vector.load %arg15[%c10_192, %c0_193] : memref<16x512xf32, #tpu.memory_space<vmem>>, vector<1x512xf32>
    %286 = arith.mulf %285, %283 : vector<1x512xf32>
    %c10_194 = arith.constant 10 : index
    %c0_195 = arith.constant 0 : index
    %287 = vector.load %arg16[%c10_194, %c0_195] : memref<16x512xf32, #tpu.memory_space<vmem>>, vector<1x512xf32>
    %288 = arith.addf %286, %287 : vector<1x512xf32>
    %c10_196 = arith.constant 10 : index
    %c0_197 = arith.constant 0 : index
    %289 = vector.load %arg16[%c10_196, %c0_197] : memref<16x512xf32, #tpu.memory_space<vmem>>, vector<1x512xf32>
    tpu.vector_store %arg16[%c10_196, %c0_197], %288 {strides = array<i32>} : memref<16x512xf32, #tpu.memory_space<vmem>>, vector<1x512xf32>,
    %c11_198 = arith.constant 11 : index
    %c0_199 = arith.constant 0 : index
    %290 = vector.load %arg15[%c11_198, %c0_199] : memref<16x512xf32, #tpu.memory_space<vmem>>, vector<1x512xf32>
    %291 = arith.mulf %290, %288 : vector<1x512xf32>
    %c11_200 = arith.constant 11 : index
    %c0_201 = arith.constant 0 : index
    %292 = vector.load %arg16[%c11_200, %c0_201] : memref<16x512xf32, #tpu.memory_space<vmem>>, vector<1x512xf32>
    %293 = arith.addf %291, %292 : vector<1x512xf32>
    %c11_202 = arith.constant 11 : index
    %c0_203 = arith.constant 0 : index
    %294 = vector.load %arg16[%c11_202, %c0_203] : memref<16x512xf32, #tpu.memory_space<vmem>>, vector<1x512xf32>
    tpu.vector_store %arg16[%c11_202, %c0_203], %293 {strides = array<i32>} : memref<16x512xf32, #tpu.memory_space<vmem>>, vector<1x512xf32>,
    %c12_204 = arith.constant 12 : index
    %c0_205 = arith.constant 0 : index
    %295 = vector.load %arg15[%c12_204, %c0_205] : memref<16x512xf32, #tpu.memory_space<vmem>>, vector<1x512xf32>
    %296 = arith.mulf %295, %293 : vector<1x512xf32>
    %c12_206 = arith.constant 12 : index
    %c0_207 = arith.constant 0 : index
    %297 = vector.load %arg16[%c12_206, %c0_207] : memref<16x512xf32, #tpu.memory_space<vmem>>, vector<1x512xf32>
    %298 = arith.addf %296, %297 : vector<1x512xf32>
    %c12_208 = arith.constant 12 : index
    %c0_209 = arith.constant 0 : index
    %299 = vector.load %arg16[%c12_208, %c0_209] : memref<16x512xf32, #tpu.memory_space<vmem>>, vector<1x512xf32>
    tpu.vector_store %arg16[%c12_208, %c0_209], %298 {strides = array<i32>} : memref<16x512xf32, #tpu.memory_space<vmem>>, vector<1x512xf32>,
    %c13_210 = arith.constant 13 : index
    %c0_211 = arith.constant 0 : index
    %300 = vector.load %arg15[%c13_210, %c0_211] : memref<16x512xf32, #tpu.memory_space<vmem>>, vector<1x512xf32>
    %301 = arith.mulf %300, %298 : vector<1x512xf32>
    %c13_212 = arith.constant 13 : index
    %c0_213 = arith.constant 0 : index
    %302 = vector.load %arg16[%c13_212, %c0_213] : memref<16x512xf32, #tpu.memory_space<vmem>>, vector<1x512xf32>
    %303 = arith.addf %301, %302 : vector<1x512xf32>
    %c13_214 = arith.constant 13 : index
    %c0_215 = arith.constant 0 : index
    %304 = vector.load %arg16[%c13_214, %c0_215] : memref<16x512xf32, #tpu.memory_space<vmem>>, vector<1x512xf32>
    tpu.vector_store %arg16[%c13_214, %c0_215], %303 {strides = array<i32>} : memref<16x512xf32, #tpu.memory_space<vmem>>, vector<1x512xf32>,
    %c14_216 = arith.constant 14 : index
    %c0_217 = arith.constant 0 : index
    %305 = vector.load %arg15[%c14_216, %c0_217] : memref<16x512xf32, #tpu.memory_space<vmem>>, vector<1x512xf32>
    %306 = arith.mulf %305, %303 : vector<1x512xf32>
    %c14_218 = arith.constant 14 : index
    %c0_219 = arith.constant 0 : index
    %307 = vector.load %arg16[%c14_218, %c0_219] : memref<16x512xf32, #tpu.memory_space<vmem>>, vector<1x512xf32>
    %308 = arith.addf %306, %307 : vector<1x512xf32>
    %c14_220 = arith.constant 14 : index
    %c0_221 = arith.constant 0 : index
    %309 = vector.load %arg16[%c14_220, %c0_221] : memref<16x512xf32, #tpu.memory_space<vmem>>, vector<1x512xf32>
    tpu.vector_store %arg16[%c14_220, %c0_221], %308 {strides = array<i32>} : memref<16x512xf32, #tpu.memory_space<vmem>>, vector<1x512xf32>,
    %c15_222 = arith.constant 15 : index
    %c0_223 = arith.constant 0 : index
    %310 = vector.load %arg15[%c15_222, %c0_223] : memref<16x512xf32, #tpu.memory_space<vmem>>, vector<1x512xf32>
    %311 = arith.mulf %310, %308 : vector<1x512xf32>
    %c15_224 = arith.constant 15 : index
    %c0_225 = arith.constant 0 : index
    %312 = vector.load %arg16[%c15_224, %c0_225] : memref<16x512xf32, #tpu.memory_space<vmem>>, vector<1x512xf32>
    %313 = arith.addf %311, %312 : vector<1x512xf32>
    %c15_226 = arith.constant 15 : index
    %c0_227 = arith.constant 0 : index
    %314 = vector.load %arg16[%c15_226, %c0_227] : memref<16x512xf32, #tpu.memory_space<vmem>>, vector<1x512xf32>
    tpu.vector_store %arg16[%c15_226, %c0_227], %313 {strides = array<i32>} : memref<16x512xf32, #tpu.memory_space<vmem>>, vector<1x512xf32>,
    %c0_228 = arith.constant 0 : index
    %c0_229 = arith.constant 0 : index
    %315 = vector.load %arg10[%c0_228, %c0_229] : memref<1x32xf32, #tpu.memory_space<vmem>>, vector<1x32xf32>
    %316 = vector.broadcast %315 : vector<1x32xf32> to vector<16x32xf32>
    %317 = arith.mulf %38, %316 : vector<16x32xf32>
    %318 = vector.extract_strided_slice %70 {offsets = [0, 18], sizes = [16, 1], strides = [1, 1]} : vector<16x34xf32> to vector<16x1xf32>
    %c0_230 = arith.constant 0 : index
    %c0_231 = arith.constant 0 : index
    %319 = vector.load %arg16[%c0_230, %c0_231] : memref<16x512xf32, #tpu.memory_space<vmem>>, vector<16x32xf32>
    %320 = vector.broadcast %318 : vector<16x1xf32> to vector<16x32xf32>
    %321 = arith.mulf %320, %319 : vector<16x32xf32>
    %322 = arith.addf %317, %321 : vector<16x32xf32>
    %323 = vector.extract_strided_slice %70 {offsets = [0, 19], sizes = [16, 1], strides = [1, 1]} : vector<16x34xf32> to vector<16x1xf32>
    %c0_232 = arith.constant 0 : index
    %c32_233 = arith.constant 32 : index
    %324 = vector.load %arg16[%c0_232, %c32_233] : memref<16x512xf32, #tpu.memory_space<vmem>>, vector<16x32xf32>
    %325 = vector.broadcast %323 : vector<16x1xf32> to vector<16x32xf32>
    %326 = arith.mulf %325, %324 : vector<16x32xf32>
    %327 = arith.addf %322, %326 : vector<16x32xf32>
    %328 = vector.extract_strided_slice %70 {offsets = [0, 20], sizes = [16, 1], strides = [1, 1]} : vector<16x34xf32> to vector<16x1xf32>
    %c0_234 = arith.constant 0 : index
    %c64_235 = arith.constant 64 : index
    %329 = vector.load %arg16[%c0_234, %c64_235] : memref<16x512xf32, #tpu.memory_space<vmem>>, vector<16x32xf32>
    %330 = vector.broadcast %328 : vector<16x1xf32> to vector<16x32xf32>
    %331 = arith.mulf %330, %329 : vector<16x32xf32>
    %332 = arith.addf %327, %331 : vector<16x32xf32>
    %333 = vector.extract_strided_slice %70 {offsets = [0, 21], sizes = [16, 1], strides = [1, 1]} : vector<16x34xf32> to vector<16x1xf32>
    %c0_236 = arith.constant 0 : index
    %c96_237 = arith.constant 96 : index
    %334 = vector.load %arg16[%c0_236, %c96_237] : memref<16x512xf32, #tpu.memory_space<vmem>>, vector<16x32xf32>
    %335 = vector.broadcast %333 : vector<16x1xf32> to vector<16x32xf32>
    %336 = arith.mulf %335, %334 : vector<16x32xf32>
    %337 = arith.addf %332, %336 : vector<16x32xf32>
    %338 = vector.extract_strided_slice %70 {offsets = [0, 22], sizes = [16, 1], strides = [1, 1]} : vector<16x34xf32> to vector<16x1xf32>
    %c0_238 = arith.constant 0 : index
    %c128_239 = arith.constant 128 : index
    %339 = vector.load %arg16[%c0_238, %c128_239] : memref<16x512xf32, #tpu.memory_space<vmem>>, vector<16x32xf32>
    %340 = vector.broadcast %338 : vector<16x1xf32> to vector<16x32xf32>
    %341 = arith.mulf %340, %339 : vector<16x32xf32>
    %342 = arith.addf %337, %341 : vector<16x32xf32>
    %343 = vector.extract_strided_slice %70 {offsets = [0, 23], sizes = [16, 1], strides = [1, 1]} : vector<16x34xf32> to vector<16x1xf32>
    %c0_240 = arith.constant 0 : index
    %c160_241 = arith.constant 160 : index
    %344 = vector.load %arg16[%c0_240, %c160_241] : memref<16x512xf32, #tpu.memory_space<vmem>>, vector<16x32xf32>
    %345 = vector.broadcast %343 : vector<16x1xf32> to vector<16x32xf32>
    %346 = arith.mulf %345, %344 : vector<16x32xf32>
    %347 = arith.addf %342, %346 : vector<16x32xf32>
    %348 = vector.extract_strided_slice %70 {offsets = [0, 24], sizes = [16, 1], strides = [1, 1]} : vector<16x34xf32> to vector<16x1xf32>
    %c0_242 = arith.constant 0 : index
    %c192_243 = arith.constant 192 : index
    %349 = vector.load %arg16[%c0_242, %c192_243] : memref<16x512xf32, #tpu.memory_space<vmem>>, vector<16x32xf32>
    %350 = vector.broadcast %348 : vector<16x1xf32> to vector<16x32xf32>
    %351 = arith.mulf %350, %349 : vector<16x32xf32>
    %352 = arith.addf %347, %351 : vector<16x32xf32>
    %353 = vector.extract_strided_slice %70 {offsets = [0, 25], sizes = [16, 1], strides = [1, 1]} : vector<16x34xf32> to vector<16x1xf32>
    %c0_244 = arith.constant 0 : index
    %c224_245 = arith.constant 224 : index
    %354 = vector.load %arg16[%c0_244, %c224_245] : memref<16x512xf32, #tpu.memory_space<vmem>>, vector<16x32xf32>
    %355 = vector.broadcast %353 : vector<16x1xf32> to vector<16x32xf32>
    %356 = arith.mulf %355, %354 : vector<16x32xf32>
    %357 = arith.addf %352, %356 : vector<16x32xf32>
    %358 = vector.extract_strided_slice %70 {offsets = [0, 26], sizes = [16, 1], strides = [1, 1]} : vector<16x34xf32> to vector<16x1xf32>
    %c0_246 = arith.constant 0 : index
    %c256_247 = arith.constant 256 : index
    %359 = vector.load %arg16[%c0_246, %c256_247] : memref<16x512xf32, #tpu.memory_space<vmem>>, vector<16x32xf32>
    %360 = vector.broadcast %358 : vector<16x1xf32> to vector<16x32xf32>
    %361 = arith.mulf %360, %359 : vector<16x32xf32>
    %362 = arith.addf %357, %361 : vector<16x32xf32>
    %363 = vector.extract_strided_slice %70 {offsets = [0, 27], sizes = [16, 1], strides = [1, 1]} : vector<16x34xf32> to vector<16x1xf32>
    %c0_248 = arith.constant 0 : index
    %c288_249 = arith.constant 288 : index
    %364 = vector.load %arg16[%c0_248, %c288_249] : memref<16x512xf32, #tpu.memory_space<vmem>>, vector<16x32xf32>
    %365 = vector.broadcast %363 : vector<16x1xf32> to vector<16x32xf32>
    %366 = arith.mulf %365, %364 : vector<16x32xf32>
    %367 = arith.addf %362, %366 : vector<16x32xf32>
    %368 = vector.extract_strided_slice %70 {offsets = [0, 28], sizes = [16, 1], strides = [1, 1]} : vector<16x34xf32> to vector<16x1xf32>
    %c0_250 = arith.constant 0 : index
    %c320_251 = arith.constant 320 : index
    %369 = vector.load %arg16[%c0_250, %c320_251] : memref<16x512xf32, #tpu.memory_space<vmem>>, vector<16x32xf32>
    %370 = vector.broadcast %368 : vector<16x1xf32> to vector<16x32xf32>
    %371 = arith.mulf %370, %369 : vector<16x32xf32>
    %372 = arith.addf %367, %371 : vector<16x32xf32>
    %373 = vector.extract_strided_slice %70 {offsets = [0, 29], sizes = [16, 1], strides = [1, 1]} : vector<16x34xf32> to vector<16x1xf32>
    %c0_252 = arith.constant 0 : index
    %c352_253 = arith.constant 352 : index
    %374 = vector.load %arg16[%c0_252, %c352_253] : memref<16x512xf32, #tpu.memory_space<vmem>>, vector<16x32xf32>
    %375 = vector.broadcast %373 : vector<16x1xf32> to vector<16x32xf32>
    %376 = arith.mulf %375, %374 : vector<16x32xf32>
    %377 = arith.addf %372, %376 : vector<16x32xf32>
    %378 = vector.extract_strided_slice %70 {offsets = [0, 30], sizes = [16, 1], strides = [1, 1]} : vector<16x34xf32> to vector<16x1xf32>
    %c0_254 = arith.constant 0 : index
    %c384_255 = arith.constant 384 : index
    %379 = vector.load %arg16[%c0_254, %c384_255] : memref<16x512xf32, #tpu.memory_space<vmem>>, vector<16x32xf32>
    %380 = vector.broadcast %378 : vector<16x1xf32> to vector<16x32xf32>
    %381 = arith.mulf %380, %379 : vector<16x32xf32>
    %382 = arith.addf %377, %381 : vector<16x32xf32>
    %383 = vector.extract_strided_slice %70 {offsets = [0, 31], sizes = [16, 1], strides = [1, 1]} : vector<16x34xf32> to vector<16x1xf32>
    %c0_256 = arith.constant 0 : index
    %c416_257 = arith.constant 416 : index
    %384 = vector.load %arg16[%c0_256, %c416_257] : memref<16x512xf32, #tpu.memory_space<vmem>>, vector<16x32xf32>
    %385 = vector.broadcast %383 : vector<16x1xf32> to vector<16x32xf32>
    %386 = arith.mulf %385, %384 : vector<16x32xf32>
    %387 = arith.addf %382, %386 : vector<16x32xf32>
    %388 = vector.extract_strided_slice %70 {offsets = [0, 32], sizes = [16, 1], strides = [1, 1]} : vector<16x34xf32> to vector<16x1xf32>
    %c0_258 = arith.constant 0 : index
    %c448_259 = arith.constant 448 : index
    %389 = vector.load %arg16[%c0_258, %c448_259] : memref<16x512xf32, #tpu.memory_space<vmem>>, vector<16x32xf32>
    %390 = vector.broadcast %388 : vector<16x1xf32> to vector<16x32xf32>
    %391 = arith.mulf %390, %389 : vector<16x32xf32>
    %392 = arith.addf %387, %391 : vector<16x32xf32>
    %393 = vector.extract_strided_slice %70 {offsets = [0, 33], sizes = [16, 1], strides = [1, 1]} : vector<16x34xf32> to vector<16x1xf32>
    %c0_260 = arith.constant 0 : index
    %c480_261 = arith.constant 480 : index
    %394 = vector.load %arg16[%c0_260, %c480_261] : memref<16x512xf32, #tpu.memory_space<vmem>>, vector<16x32xf32>
    %395 = vector.broadcast %393 : vector<16x1xf32> to vector<16x32xf32>
    %396 = arith.mulf %395, %394 : vector<16x32xf32>
    %397 = arith.addf %392, %396 : vector<16x32xf32>
    %398 = arith.truncf %397 : vector<16x32xf32> to vector<16x32xbf16>
    %c0_262 = arith.constant 0 : index
    %c0_263 = arith.constant 0 : index
    %399 = vector.load %arg11[%c0_262, %c0_263] : memref<32x32xbf16, #tpu.memory_space<vmem>>, vector<32x32xbf16>
    %cst_264 = arith.constant dense<0.000000e+00> : vector<16x32xf32>
    %400 = tpu.matmul %398, %399, %cst_264 {dimension_numbers = #tpu.dot_dimension_numbers<[1], [0], [0], [1], [0, 0, 1, 1], [], []>} : vector<16x32xbf16>, vector<32x32xbf16>, vector<16x32xf32> -> vector<16x32xf32>
    %401 = arith.truncf %67 : vector<16x32xf32> to vector<16x32xbf16>
    %c0_265 = arith.constant 0 : index
    %c0_266 = arith.constant 0 : index
    %402 = vector.load %arg12[%c0_265, %c0_266] : memref<32x32xbf16, #tpu.memory_space<vmem>>, vector<32x32xbf16>
    %cst_267 = arith.constant dense<0.000000e+00> : vector<16x32xf32>
    %403 = tpu.matmul %401, %402, %cst_267 {dimension_numbers = #tpu.dot_dimension_numbers<[1], [0], [0], [1], [0, 0, 1, 1], [], []>} : vector<16x32xbf16>, vector<32x32xbf16>, vector<16x32xf32> -> vector<16x32xf32>
    %404 = arith.addf %400, %403 : vector<16x32xf32>
    %c0_268 = arith.constant 0 : index
    %c0_269 = arith.constant 0 : index
    %c0_270 = arith.constant 0 : index
    %405 = vector.load %arg13[%c0_268, %c0_269, %c0_270] : memref<1x16x32xf32, #tpu.memory_space<vmem>>, vector<1x16x32xf32>
    %406 = vector.shape_cast %405 : vector<1x16x32xf32> to vector<16x32xf32>
    %407 = vector.shape_cast %404 : vector<16x32xf32> to vector<1x16x32xf32>
    tpu.vector_store %arg13[%c0_268, %c0_269, %c0_270], %407 {strides = array<i32>} : memref<1x16x32xf32, #tpu.memory_space<vmem>>, vector<1x16x32xf32>,
    return
  }
  func.func @transform_0(%arg0: i32) -> (i32, i32, i32) {
    %c0_i32 = arith.constant 0 : i32
    %c0_i32_0 = arith.constant 0 : i32
    %c0_i32_1 = arith.constant 0 : i32
    return %arg0, %c0_i32, %c0_i32_0 : i32, i32, i32
  }
  func.func @transform_1(%arg0: i32) -> (i32, i32) {
    %c0_i32 = arith.constant 0 : i32
    %c0_i32_0 = arith.constant 0 : i32
    %c0_i32_1 = arith.constant 0 : i32
    return %c0_i32, %c0_i32_0 : i32, i32
  }
  func.func @transform_2(%arg0: i32) -> (i32, i32) {
    %c0_i32 = arith.constant 0 : i32
    %c0_i32_0 = arith.constant 0 : i32
    %c0_i32_1 = arith.constant 0 : i32
    return %c0_i32, %c0_i32_0 : i32, i32
  }
  func.func @transform_3(%arg0: i32) -> (i32, i32) {
    %c0_i32 = arith.constant 0 : i32
    %c0_i32_0 = arith.constant 0 : i32
    %c0_i32_1 = arith.constant 0 : i32
    return %c0_i32, %c0_i32_0 : i32, i32
  }
  func.func @transform_4(%arg0: i32) -> (i32, i32) {
    %c0_i32 = arith.constant 0 : i32
    %c0_i32_0 = arith.constant 0 : i32
    %c0_i32_1 = arith.constant 0 : i32
    return %c0_i32, %c0_i32_0 : i32, i32
  }
  func.func @transform_5(%arg0: i32) -> (i32, i32) {
    %c0_i32 = arith.constant 0 : i32
    %c0_i32_0 = arith.constant 0 : i32
    %c0_i32_1 = arith.constant 0 : i32
    return %c0_i32, %c0_i32_0 : i32, i32
  }
  func.func @transform_6(%arg0: i32) -> (i32, i32) {
    %c0_i32 = arith.constant 0 : i32
    %c0_i32_0 = arith.constant 0 : i32
    %c0_i32_1 = arith.constant 0 : i32
    return %c0_i32, %c0_i32_0 : i32, i32
  }
  func.func @transform_7(%arg0: i32) -> (i32, i32) {
    %c0_i32 = arith.constant 0 : i32
    %c0_i32_0 = arith.constant 0 : i32
    %c0_i32_1 = arith.constant 0 : i32
    return %c0_i32, %c0_i32_0 : i32, i32
  }
  func.func @transform_8(%arg0: i32) -> (i32, i32) {
    %c0_i32 = arith.constant 0 : i32
    %c0_i32_0 = arith.constant 0 : i32
    %c0_i32_1 = arith.constant 0 : i32
    return %c0_i32, %c0_i32_0 : i32, i32
  }
  func.func @transform_9(%arg0: i32) -> (i32, i32) {
    %c0_i32 = arith.constant 0 : i32
    %c0_i32_0 = arith.constant 0 : i32
    %c0_i32_1 = arith.constant 0 : i32
    return %c0_i32, %c0_i32_0 : i32, i32
  }
  func.func @transform_10(%arg0: i32) -> (i32, i32) {
    %c0_i32 = arith.constant 0 : i32
    %c0_i32_0 = arith.constant 0 : i32
    %c0_i32_1 = arith.constant 0 : i32
    return %c0_i32, %c0_i32_0 : i32, i32
  }
  func.func @transform_11(%arg0: i32) -> (i32, i32) {
    %c0_i32 = arith.constant 0 : i32
    %c0_i32_0 = arith.constant 0 : i32
    %c0_i32_1 = arith.constant 0 : i32
    return %c0_i32, %c0_i32_0 : i32, i32
  }
  func.func @transform_12(%arg0: i32) -> (i32, i32, i32) {
    %c0_i32 = arith.constant 0 : i32
    %c0_i32_0 = arith.constant 0 : i32
    %c0_i32_1 = arith.constant 0 : i32
    return %arg0, %c0_i32, %c0_i32_0 : i32, i32, i32
  }
}

</mosaic_0001>

<bundles_post_ra>
// kernel: tpu_custom_call.1
= control target key start
LH: loop header
LB: loop body
LE: loop exit
PB: predicated region body
PF: predicated region fallthrough
CT: control target
= control target key end

     0   :  { %s3796_s0 = inlined_call_operand.hbm [shape: bf16[2,16,32], index: 0, kind: input, shape index: {}]   ;;  %s3797_s1 = inlined_call_operand.hbm [shape: bf16[32,32], index: 1, kind: input, shape index: {}]   ;;  %s3798_s2 = inlined_call_operand.hbm [shape: bf16[32,32], index: 2, kind: input, shape index: {}]   ;;  %s3799_s3 = inlined_call_operand.hbm [shape: f32[4,32], index: 3, kind: input, shape index: {}]   ;;  %s3800_s4 = inlined_call_operand.hbm [shape: f32[4,32], index: 4, kind: input, shape index: {}]   ;;  %s3801_s5 = inlined_call_operand.hbm [shape: bf16[32,34], index: 5, kind: input, shape index: {}]   ;;  %s3802_s6 = inlined_call_operand.vmem [shape: f32[2,32], index: 6, kind: input, shape index: {}]   ;;  %s3803_s7 = inlined_call_operand.vmem [shape: f32[1,32], index: 7, kind: input, shape index: {}]   ;;  %s3804_s8 = inlined_call_operand.hbm [shape: f32[16,32], index: 8, kind: input, shape index: {}]   ;;  %s3805_s9 = inlined_call_operand.vmem [shape: f32[1,32], index: 9, kind: input, shape index: {}]   ;;  %s3806_s10 = inlined_call_operand.hbm [shape: bf16[32,32], index: 10, kind: input, shape index: {}]   ;;  %s3807_s11 = inlined_call_operand.hbm [shape: bf16[32,32], index: 11, kind: input, shape index: {}]   ;;  %s3808_s12 = inlined_call_operand.hbm [shape: f32[2,16,32], index: 12, kind: output, shape index: {}]  }
   0x1   :  { %3811 = sst [smem:[#allocation27_spill]] %s3797_s1 }
   0x2   :  { %3812 = sst [smem:[#allocation28_spill]] %s3798_s2 }
   0x3   :  { %3813 = sst [smem:[#allocation29_spill]] %s3799_s3 }
   0x4   :  { %3814 = sst [smem:[#allocation30_spill]] %s3800_s4 }
   0x5   :  { %3815 = sst [smem:[#allocation31_spill]] %s3801_s5 }
   0x6   :  { %3816 = sst [smem:[#allocation32_spill]] %s3804_s8 }
   0x7   :  { %3817 = sst [smem:[#allocation33_spill]] %s3806_s10 }
   0x8   :  { %17 = vsyncpa [#allocation6], 0 }
   0x9   :  { %19 = vsyncpa [#allocation6 + $0x1], 0 }
   0xa   :  { %20 = vsyncpa [#allocation9], 0 }
   0xb   :  { %21 = vsyncpa [#allocation12], 0 }
   0xc   :  { %22 = vsyncpa [#allocation15], 0 }
   0xd   :  { %23 = vsyncpa [#allocation18], 0 }
   0xe   :  { %24 = vsyncpa [#allocation7], 0 }
   0xf   :  { %26 = vsyncpa [#allocation7 + $0x1], 0  ;;  %s2952_s21 = smov 0   ;;  %s2954_s22 = smov 0  }
  0x10   :  { %s2956_s23 = smov 0   ;;  %s2958_s24 = smov 0  }
  0x11 LB: > { %s3818_s1 = sld [smem:[#allocation27_spill]]  ;;  %s2976_s28 = sadd.s32 4294967295, %s2835_s24   ;;  %s2835_s24 = sphi %s2958_s24, %s3840_s24   ;;  %s2831_s23 = sphi %s2956_s23, %s3839_s23   ;;  %s2827_s22 = sphi %s2954_s22, %s3838_s22   ;;  %s2823_s21 = sphi %s2952_s21, %s3837_s21  }
  0x12   : > { %p2040_p0 = scmp.ge.s32.totalorder %s2835_s24, 1  ;;  %p53_p1 = scmp.eq.s32.totalorder %s2976_s28, 0 }
  0x13   : > { %p320_p2 = scmp.lt.s32.totalorder %s2835_s24, 3  ;;  %s2837_s30 = smov [#allocation8]  }
  0x14   : > { %s333_s13 = sshll.u32 %s2837_s30, 4  ;;  %s3820_s3 = sld [smem:[#allocation29_spill]]  ;;  %s334_s13 = int_to_ptr.vmem [resolvable:$true] %s333_s13 }
  0x15   : > { %p2981_p3 = pnand %p2040_p0, %p320_p2  ;;  %s3822_s5 = sld [smem:[#allocation31_spill]] }
  0x16   : > { %s2838_s25 = smov [#allocation11]   ;;  %s3809_s30 = smov 64  }
  0x17   : > { %s331_s27 = sshll.u32 %s3818_s1, 4  ;;  %p2170_p4 = pneg %p2981_p3  ;;  %s332_s27 = int_to_ptr.hbm [resolvable:$true] %s331_s27 }
  0x18   : > { %s362_s26 = sshll.u32 %s2838_s25, 4  ;;  %s3810_s1 = smov 4   ;;  %s363_s26 = int_to_ptr.vmem [resolvable:$true] %s362_s26 }
  0x19   : > { %p2993_p6 = pnand %p2170_p4, %p53_p1  ;;  %s3823_s10 = sld [smem:[#allocation33_spill]] }
  0x1a   : > { %s360_s16 = sshll.u32 %s3820_s3, 4  ;;  %s2841_s18 = smov [#allocation14]   ;;  %s361_s16 = int_to_ptr.hbm [resolvable:$true] %s360_s16 }
  0x1b   : > { %s383_s20 = sshll.u32 %s3822_s5, 4  ;;  %s385_s19 = sshll.u32 %s2841_s18, 4  ;;  %s384_s20 = int_to_ptr.hbm [resolvable:$true] %s383_s20  ;;  %s386_s19 = int_to_ptr.vmem [resolvable:$true] %s385_s19 }
  0x1c   : > { %2173 = dma.hbm_to_vmem [thread:$0]  (!%p2993_p6), %s332_s27, 256, %s334_s13, [#allocation9], %s3809_s30, %s3809_s30, %s3810_s1  }
  0x1d   : > { %2179 = dma.hbm_to_vmem [thread:$0]  (!%p2993_p6), %s361_s16, 64, %s363_s26, [#allocation12]  }
  0x1e   : > { %2185 = dma.hbm_to_vmem [thread:$0]  (!%p2993_p6), %s384_s20, 256, %s386_s19, [#allocation15], %s3809_s30, %s3809_s30, %s3810_s1  }
  0x1f   : > { %s420_s3 = sshll.u32 %s3823_s10, 4  ;;  %s2842_s25 = smov [#allocation17]   ;;  %s421_s3 = int_to_ptr.hbm [resolvable:$true] %s420_s3 }
  0x20   : > { %s422_s27 = sshll.u32 %s2842_s25, 4  ;;  %s3824_s2 = sld [smem:[#allocation28_spill]]  ;;  %s423_s27 = int_to_ptr.vmem [resolvable:$true] %s422_s27 }
  0x21   : > { %2191 = dma.hbm_to_vmem [thread:$0]  (!%p2993_p6), %s421_s3, 256, %s423_s27, [#allocation18], %s3809_s30, %s3809_s30, %s3810_s1  }
  0x22   : > { %s3825_s4 = sld [smem:[#allocation30_spill]]  ;;  %s2843_s18 = smov [#allocation10]  }
  0x23   : > { %s347_s20 = sshll.u32 %s2843_s18, 4  ;;  %s2844_s5 = smov [#allocation13]   ;;  %s348_s20 = int_to_ptr.vmem [resolvable:$true] %s347_s20 }
  0x24   : > { %s374_s19 = sshll.u32 %s2844_s5, 4  ;;  %s3826_s8 = sld [smem:[#allocation32_spill]]  ;;  %s375_s19 = int_to_ptr.vmem [resolvable:$true] %s374_s19 }
  0x25   : > { %s2845_s27 = smov [#allocation16]   ;;  %s434_s18 = sshll.u32 %s3807_s11, 4  ;;  %s435_s18 = int_to_ptr.hbm [resolvable:$true] %s434_s18 }
  0x26   : > { %s345_s16 = sshll.u32 %s3824_s2, 4  ;;  %s405_s26 = sshll.u32 %s2845_s27, 4  ;;  %s346_s16 = int_to_ptr.hbm [resolvable:$true] %s345_s16  ;;  %s406_s26 = int_to_ptr.vmem [resolvable:$true] %s405_s26 }
  0x27   : > { %2176 = dma.hbm_to_vmem [thread:$0]  (!%p2993_p6), %s346_s16, 256, %s348_s20, [#allocation9], %s3809_s30, %s3809_s30, %s3810_s1  }
  0x28   : > { %s372_s15 = sshll.u32 %s3825_s4, 4  ;;  %s2846_s20 = smov 128   ;;  %s373_s15 = int_to_ptr.hbm [resolvable:$true] %s372_s15 }
  0x29   : > { %2182 = dma.hbm_to_vmem [thread:$0]  (!%p2993_p6), %s373_s15, 64, %s375_s19, [#allocation12]  }
  0x2a   : > { %s403_s3 = sshll.u32 %s3826_s8, 4  ;;  %s2847_s5 = smov 8   ;;  %s404_s3 = int_to_ptr.hbm [resolvable:$true] %s403_s3 }
  0x2b   : > { %2188 = dma.hbm_to_vmem [thread:$0]  (!%p2993_p6), %s404_s3, 256, %s406_s26, [#allocation15], %s2846_s20, %s2846_s20, %s2847_s5  }
  0x2c   : > { %s2848_s15 = smov [#allocation19]   ;;  %s2039_s25 = sadd.s32 4294967294, %s2835_s24  }
  0x2d   : > { %s436_s19 = sshll.u32 %s2848_s15, 4  ;;  %s3048_s13 = sadd.s32 1, %s2835_s24   ;;  %s437_s19 = int_to_ptr.vmem [resolvable:$true] %s436_s19 }
  0x2e   : > { %2194 = dma.hbm_to_vmem [thread:$0]  (!%p2993_p6), %s435_s18, 256, %s437_s19, [#allocation18], %s3809_s30, %s3809_s30, %s3810_s1  }
  0x2f   : > { %s36_s27 = ssub.s32 %s2835_s24, %s3048_s13  ;;  %s39_s3 = sadd.s32 1, %s2831_s23 }
  0x30   : > { %p37_p7 = scmp.eq.s32.totalorder %s36_s27, 0  ;;  %p46_p8 = scmp.ne.s32.totalorder %s2831_s23, %s2827_s22 }
  0x31   : > { %p47_p9 = scmp.eq.s32.totalorder %s2835_s24, 0  ;;  %p52_p10 = scmp.ne.s32.totalorder %s2827_s22, %s2823_s21 }
  0x32   : > { %s3059_s26 = scalar_select %p37_p7, %s2831_s23, %s39_s3  }
  0x33   : > { %p3061_p11 = por %p47_p9, %p46_p8  ;;  %p3067_p12 = por %p53_p1, %p52_p10 }
  0x34   : > { %p307_p13 = scmp.eq.s32.totalorder %s2976_s28, 1  ;;  %p313_p0 = scmp.eq.s32.totalorder %s2039_s25, 1 }
  0x35   : > { %p2211_p2 = scmp.lt.s32.totalorder %s2835_s24, 2  ;;  %s450_s14 = sand.u32 1, %s2831_s23  }
  0x36   : > { %p3074_p4 = por %p307_p13, %p46_p8  ;;  %p3078_p6 = por %p313_p0, %p52_p10 }
  0x37   : > { %s2050_s5 = sshll.u32 %s450_s14, 3  ;;  %s2121_s15 = sshll.u32 %s2835_s24, 3 }
  0x38   : > { %s459_s3 = scalar_lea.hbm %s3796_s0, %s2121_s15  ;;  %s454_s30 = scalar_lea.vmem [#allocation5], %s2050_s5 }
  0x39   : > { %s462_s1 = sshll.u32 %s454_s30, 4  ;;  %s460_s2 = sshll.u32 %s459_s3, 4  ;;  %s463_s1 = int_to_ptr.vmem [resolvable:$true] %s462_s1  ;;  %s461_s2 = int_to_ptr.hbm [resolvable:$true] %s460_s2 }
  0x3a   : > { %p3088_p7 = pnand %p2211_p2, %p3061_p11  ;;  %s451_s4 = scalar_lea.sflag [#allocation6], %s450_s14 }
  0x3b   : > { %s2723_s8 = sshra.s32 %s461_s2, 4  ;;  %s2730_s15 = scalar_lea.hbm %s3796_s0, 16  ;;  %s2724_s8 = int_to_ptr.hbm [resolvable:$true] %s2723_s8 }
  0x3c   : > { %s2725_s10 = scalar_lea.hbm %s2724_s8, 8  ;;  %p2727_p9 = pneg %p3088_p7 }
  0x3d   : > { %p2726_p8 = scmp.ne.s32.totalorder %s2724_s8, %s2725_s10  ;;  %p2731_p11 = scmp.lt.s32.totalorder %s2724_s8, %s3796_s0 }
  0x3e   : > { %p2732_p0 = scmp.lt.s32.totalorder %s2730_s15, %s2725_s10 }
  0x3f   : > { %p2728_p10 = pnand %p2727_p9, %p2726_p8 }
  0x40   : > { %p2733_p2 = por %p2732_p0, %p2731_p11 }
  0x41   : > { %p2729_p13 = pneg %p2728_p10 }
  0x43   : > { %p2734_p5 = pnand %p2733_p2, %p2729_p13 }
  0x45   : > { %2737 = shalt.err (!%p2734_p5)
}
  0x46   : > { %s3832_s14 = smov 4   ;;  %s3833_s27 = smov 64  }
  0x47   : > { %2198 = dma.hbm_to_vmem [thread:$0]  (!%p3088_p7), %s461_s2, 128, %s463_s1, %s451_s4, %s3833_s27, %s3833_s27, %s3832_s14  }
  0x48   : > { %474 = sbr.rel (%p2981_p3) target bundleno = 1166 (0x48e), region = 68  ;;  %s3108_s3 = sand.u32 (!%p2981_p3), 1, %s2827_s22  }
  0x49   : > { %s2054_s8 = sshll.u32 (!%p2981_p3), %s3108_s3, 3  ;;  %s477_s10 = scalar_lea.sflag (!%p2981_p3), [#allocation6], %s3108_s3 }
  0x4a   : > { %s3112_s5 = scalar_lea.vmem (!%p2981_p3), [#allocation5], %s2054_s8 }
  0x4d   : > { %2798 = dma.done.wait (%p3067_p12), %s477_s10, 128  }
  0x4e   : > { %2800 = vsyncadd (%p3067_p12), %s477_s10, 4294967168 }
  0x4f   : > { %2802 = dma.done.wait (%p53_p1), [#allocation9], 512  }
  0x50   : > { %2804 = vsyncadd (%p53_p1), [#allocation9], 4294966784 }
  0x51   : > { %2806 = dma.done.wait (%p53_p1), [#allocation12], 128  }
  0x52   : > { %2808 = vsyncadd (%p53_p1), [#allocation12], 4294967168 }
  0x53   : > { %2810 = dma.done.wait (%p53_p1), [#allocation15], 512  }
  0x54   : > { %2812 = vsyncadd (%p53_p1), [#allocation15], 4294966784 }
  0x55   : > { %2814 = dma.done.wait (%p53_p1), [#allocation18], 512  }
  0x56   : > { %2816 = vsyncadd (%p53_p1), [#allocation18], 4294966784  ;;  %v2124_v0 = vld [vmem:[#allocation8 + $0x8] sm:$0xff]  ;;  %v2123_v1 = vld [vmem:[#allocation8] sm:$0xff]  ;;  %vm586_vm0 = vcmask 261120   ;;  %vm634_vm1 = vcmask 253952  }
  0x57   : > { %596 = vmatpush.bf16.msra.mxu0 %v2124_v0  ;;  %v2122_v2 = vld [vmem:[%s3112_s5] sm:$0xff]  ;;  %v2849_v3 = vmov 0.0   ;;  %vm636_vm2 = vcmask 254976   ;;  %v2127_v5 = vld [vmem:[#allocation14] sm:$0xff]  ;;  %v2368_v8 = vld [vmem:[#allocation11] ss:$0 sm:$0xff] }
  0x58   : > { %635 = vst.msk [vmem:[#allocation2] sm:$0x1] %vm634_vm1, %v2849_v3  ;;  %v2128_v4 = vld [vmem:[#allocation14 + $0x8] sm:$0xff]  ;;  %v2369_v9 = vld [vmem:[#allocation11 + $0x1] ss:$0 sm:$0xff]  ;;  %v2850_v27 = vmov 4  }
  0x59   : > { %637 = vst.msk [vmem:[#allocation2 + $0x11] sm:$0x3] %vm636_vm2, %v2849_v3  ;;  %756 = vmatpush.bf16.msra.mxu2 %v2128_v4  ;;  %v2370_v14 = vld [vmem:[#allocation11 + $0x2] ss:$0 sm:$0xff]  ;;  %v2371_v15 = vld [vmem:[#allocation11 + $0x3] ss:$0 sm:$0xff]  ;;  %2305 = vset.pattern.permute.xlu1 %v2850_v27 }
  0x5a   : > { %v2851_v31 = vmov 3   ;;  %v2852_v32 = vmov 2   ;;  %v765_v50 = vld [vmem:[%s3802_s6] sm:$0x3]  ;;  %vm776_vm3 = vcmask 1041408   ;;  %vm769_vm4 = vcmask 15360  }
  0x5b   : > { %597 = vmatpush.bf16.msra.mxu0 %v2123_v1  ;;  %2304 = vset.pattern.permute.xlu2 %v2851_v31  ;;  %v2853_v53 = vmov 5   ;;  %v2854_v54 = vmov 6   ;;  %v2855_v55 = vmov 15   ;;  %v2856_v56 = vmov 7   ;;  %s2874_s16 = smov 32   ;;  %s2875_s25 = smov 64  }
  0x5c   : > { %2303 = vset.pattern.permute.xlu0 %v2852_v32  ;;  %2095 = vmatpush.msk.msra.mxu3 %vm776_vm3, %v765_v50  ;;  %v2857_v57 = vmov 10   ;;  %v2858_v58 = vmov 18   ;;  %v2859_v59 = vmov 8   ;;  %v2860_v60 = vmov 13   ;;  %s2876_s30 = smov 96   ;;  %s2063_s17 = sshll.u32 %s3108_s3, 4 }
  0x5d   : > { %757 = vmatpush.bf16.msra.mxu2 %v2127_v5  ;;  %v2861_v61 = vmov 24   ;;  %v2862_v62 = vmov 9   ;;  %v2863_v63 = vmov 14   ;;  %v2864_v0 = vmov 11   ;;  %s2133_s14 = sshll.u32 %s2976_s28, 4  ;;  %s561_s27 = scalar_lea.vmem [#allocation20], %s2063_s17 }
  0x5e   : > { %2076 = vmatmul.msk.bf16.vlgmr.msra.gmra.mxu0 %vm586_vm0, %v2122_v2  ;;  %v2865_v1 = vmov 19   ;;  %v2866_v2 = vmov 12   ;;  %v2867_v3 = vmov 20   ;;  %v2868_v4 = vmov 16   ;;  %s1887_s1 = sshll.u32 %s561_s27, 4  ;;  %s1875_s4 = scalar_lea.sflag [#allocation7], %s3108_s3  ;;  %s1888_s1 = int_to_ptr.vmem [resolvable:$true] %s1887_s1 }
  0x5f   : > { %v2869_v5 = vmov 25   ;;  %vm863_vm5 = vcmask 523520   ;;  %vm902_vm6 = vcmask 785920   ;;  %vm941_vm7 = vcmask 1048320  }
  0xdb   : > { %v599_v6 = vpop.f32.mrf.mxu0 }
  0xdc   : > { %638 = vst.msk [vmem:[#allocation2 + $0x1] sm:$0xff] %vm586_vm0, %v599_v6  ;;  %v2870_v6 = vmov 17  }
  0xe3   : > { %v601_v7 = vpop.f32.mrf.mxu0  ;;  %v640_v10 = vld [vmem:[#allocation2] sm:$0xff] }
  0xe4   : > { %639 = vst.msk [vmem:[#allocation2 + $0x9] sm:$0xff] %vm586_vm0, %v601_v7  ;;  %v648_v11 = vld [vmem:[#allocation2 + $0x1] sm:$0xff]  ;;  %v644_v12 = vmul.f32 %v2368_v8, %v640_v10  ;;  %v2871_v7 = vmov 27   ;;  %v2873_v10 = vmov 23  }
  0xe5   : > { %v652_v13 = vmul.f32 %v2369_v9, %v648_v11 }
  0xe7   : > { %v654_v18 = vadd.f32 %v652_v13, %v644_v12 }
  0xeb   : > { %v641_v16 = vld [vmem:[#allocation2 + $0x8] sm:$0xff] }
  0xec   : > { %v649_v17 = vld [vmem:[#allocation2 + $0x9] sm:$0xff]  ;;  %v645_v20 = vmul.f32 %v2368_v8, %v641_v16  ;;  %v2872_v8 = vmov 21  }
  0xed   : > { %v656_v19 = vld [vmem:[#allocation2 + $0x2] sm:$0xff]  ;;  %v653_v21 = vmul.f32 %v2369_v9, %v649_v17  ;;  %v657_v22 = vld [vmem:[#allocation2 + $0xa] sm:$0xff] }
  0xee   : > { %v660_v23 = vmul.f32 %v2370_v14, %v656_v19  ;;  %v664_v24 = vld [vmem:[#allocation2 + $0x3] sm:$0xff]  ;;  %v661_v25 = vmul.f32 %v2370_v14, %v657_v22  ;;  %v665_v26 = vld [vmem:[#allocation2 + $0xb] sm:$0xff]  ;;  %v2372_v19 = vld [vmem:[%s3803_s7] ss:$0 sm:$0xff] }
  0xef   : > { %v655_v28 = vadd.f32 %v653_v21, %v645_v20  ;;  %v668_v30 = vmul.f32 %v2371_v15, %v664_v24  ;;  %v669_v34 = vmul.f32 %v2371_v15, %v665_v26 }
  0xf0   : > { %v662_v29 = vadd.f32 %v660_v23, %v654_v18 }
  0xf1   : > { %v663_v33 = vadd.f32 %v661_v25, %v655_v28 }
  0xf2   : > { %v670_v35 = vadd.f32 %v668_v30, %v662_v29 }
  0xf3   : > { %v671_v36 = vadd.f32 %v669_v34, %v663_v33 }
  0xf4   : > { %v672_v37 = vsub.f32 0.0, %v670_v35 }
  0xf5   : > { %v673_v38 = vsub.f32 0.0, %v671_v36 }
  0xf6   : > { %v674_v39 = vmul.f32 1.442695, %v672_v37 }
  0xf7   : > { %v676_v40 = vmul.f32 1.442695, %v673_v38 }
  0xf8   : > { %2394 = vpow2.f32 %v674_v39 }
  0xf9   : > { %2396 = vpow2.f32 %v676_v40 }
  0xfe   : > { %v2395_v41 = vpop.eup %2394 }
  0xff   : > { %v678_v42 = vadd.f32 1.0, %v2395_v41  ;;  %v2397_v43 = vpop.eup %2396 }
 0x100   : > { %v679_v44 = vadd.f32 1.0, %v2397_v43 }
 0x101   : > { %2398 = vrcp.f32 %v678_v42 }
 0x102   : > { %2400 = vrcp.f32 %v679_v44 }
 0x107   : > { %v2399_v45 = vpop.eup %2398 }
 0x108   : > { %v2401_v46 = vpop.eup %2400  ;;  %v3141_v47 = vmul.f32 %v2399_v45, %v670_v35 }
 0x109   : > { %v3143_v48 = vmul.f32 %v2401_v46, %v671_v36 }
 0x10b   : > { %v730_v49 = vpack.c.bf16 %v3143_v48, %v3141_v47 }
 0x10d   : > { %2094 = vmatmul.msk.bf16.vlgmr.msra.gmra.mxu2 %vm586_vm0, %v730_v49 }
 0x190   : > { %v3151_v51 = vpop.f32.mrf.mxu2 }
 0x191   : > { %906 = vperm.xlu1 %2305, %v3151_v51   ;;  %867 = vperm.xlu2 %2304, %v3151_v51  }
 0x192   : > { %836 = vperm.xlu0 %2303, %v3151_v51   ;;  %2096 = vmatmul.msk.f32.vlgmr.msra.gmra.mxu3 %vm769_vm4, %v3151_v51 }
 0x198   : > { %v3157_v52 = vpop.f32.mrf.mxu2 }
 0x199   : > { %2306 = vset.pattern.permute.xlu1 %v2853_v53  ;;  %2307 = vset.pattern.permute.xlu2 %v2854_v54 }
 0x19a   : > { %2314 = vset.pattern.permute.xlu0 %v2855_v55  ;;  %2097 = vmatmul.msk.f32.gmra.mxu3 %vm769_vm4, %v3157_v52 }
 0x19b   : > { %945 = vperm.xlu1 %2306, %v3151_v51   ;;  %975 = vperm.xlu2 %2307, %v3151_v51  }
 0x19c   : > { %1277 = vperm.xlu0 %2314, %v3151_v51  }
 0x1a3   : > { %2308 = vset.pattern.permute.xlu1 %v2856_v56  ;;  %2311 = vset.pattern.permute.xlu2 %v2857_v57 }
 0x1a4   : > { %2319 = vset.pattern.permute.xlu0 %v2858_v58  ;;  %1005 = vperm.xlu1 %2308, %v3151_v51  }
 0x1a5   : > { %1111 = vperm.xlu2 %2311, %v3151_v51   ;;  %1511 = vperm.xlu0 %2319, %v3151_v51  }
 0x1ac   : > { %2309 = vset.pattern.permute.xlu1 %v2859_v59 }
 0x1ad   : > { %2316 = vset.pattern.permute.xlu2 %v2860_v60  ;;  %2324 = vset.pattern.permute.xlu0 %v2861_v61 }
 0x1ae   : > { %1043 = vperm.xlu1 %2309, %v3151_v51   ;;  %1217 = vperm.xlu2 %2316, %v3151_v51  }
 0x1af   : > { %1617 = vperm.xlu0 %2324, %v3151_v51  }
 0x1b6   : > { %2310 = vset.pattern.permute.xlu1 %v2862_v62  ;;  %2318 = vset.pattern.permute.xlu2 %v2863_v63 }
 0x1b7   : > { %2327 = vset.pattern.permute.xlu0 %v2852_v32  ;;  %1081 = vperm.xlu1 %2310, %v3151_v51  }
 0x1b8   : > { %1247 = vperm.xlu2 %2318, %v3151_v51   ;;  %840 = vperm.xlu0 %2327, %v3157_v52  }
 0x1bf   : > { %2312 = vset.pattern.permute.xlu1 %v2864_v0 }
 0x1c0   : > { %2320 = vset.pattern.permute.xlu2 %v2865_v1  ;;  %2331 = vset.pattern.permute.xlu0 %v2854_v54 }
 0x1c1   : > { %1141 = vperm.xlu1 %2312, %v3151_v51   ;;  %1523 = vperm.xlu2 %2320, %v3151_v51  }
 0x1c2   : > { %979 = vperm.xlu0 %2331, %v3157_v52  }
 0x1c9   : > { %2313 = vset.pattern.permute.xlu1 %v2866_v2  ;;  %2321 = vset.pattern.permute.xlu2 %v2867_v3 }
 0x1ca   : > { %2335 = vset.pattern.permute.xlu0 %v2857_v57  ;;  %1179 = vperm.xlu1 %2313, %v3151_v51  }
 0x1cb   : > { %1543 = vperm.xlu2 %2321, %v3151_v51   ;;  %1115 = vperm.xlu0 %2335, %v3157_v52  }
 0x1d2   : > { %2315 = vset.pattern.permute.xlu1 %v2868_v4 }
 0x1d3   : > { %2325 = vset.pattern.permute.xlu2 %v2869_v5  ;;  %2338 = vset.pattern.permute.xlu0 %v2860_v60 }
 0x1d4   : > { %1315 = vperm.xlu1 %2315, %v3151_v51   ;;  %1637 = vperm.xlu2 %2325, %v3151_v51  }
 0x1d5   : > { %1221 = vperm.xlu0 %2338, %v3157_v52  }
 0x1dc   : > { %2317 = vset.pattern.permute.xlu1 %v2870_v6  ;;  %2326 = vset.pattern.permute.xlu2 %v2871_v7 }
 0x1dd   : > { %2345 = vset.pattern.permute.xlu0 %v2867_v3  ;;  %1353 = vperm.xlu1 %2317, %v3151_v51  }
 0x1de   : > { %1671 = vperm.xlu2 %2326, %v3151_v51   ;;  %1547 = vperm.xlu0 %2345, %v3157_v52  }
 0x1e5   : > { %2322 = vset.pattern.permute.xlu1 %v2872_v8 }
 0x1e6   : > { %2328 = vset.pattern.permute.xlu2 %v2851_v31  ;;  %1563 = vperm.xlu1 %2322, %v3151_v51  }
 0x1e7   : > { %871 = vperm.xlu2 %2328, %v3157_v52   ;;  %2350 = vset.pattern.permute.xlu0 %v2871_v7  ;;  %v2376_v7 = vld [vmem:[#allocation16 + $0x3] ss:$0 sm:$0xff] }
 0x1eb   : > { %v3201_v9 = vpop.permute.xlu2 %867 }
 0x1ee   : > { %2323 = vset.pattern.permute.xlu1 %v2873_v10 }
 0x1ef   : > { %2329 = vset.pattern.permute.xlu2 %v2850_v27  ;;  %1597 = vperm.xlu1 %2323, %v3151_v51  }
 0x1f0   : > { %910 = vperm.xlu2 %2329, %v3157_v52  }
 0x1f5   : > { %v3207_v11 = vpop.permute.xlu2 %975 }
 0x1f7   : > { %2339 = vset.pattern.permute.xlu1 %v2855_v55 }
 0x1f8   : > { %2330 = vset.pattern.permute.xlu2 %v2853_v53  ;;  %1281 = vperm.xlu1 %2339, %v3157_v52  }
 0x1f9   : > { %949 = vperm.xlu2 %2330, %v3157_v52  }
 0x1ff   : > { %v3213_v12 = vpop.permute.xlu2 %1111 }
 0x200   : > { %2341 = vset.pattern.permute.xlu1 %v2870_v6 }
 0x201   : > { %2332 = vset.pattern.permute.xlu2 %v2856_v56  ;;  %1357 = vperm.xlu1 %2341, %v3157_v52  }
 0x202   : > { %1009 = vperm.xlu2 %2332, %v3157_v52  }
 0x203   : > { %v3218_v13 = vpop.permute.xlu1 %906 }
 0x204   : > { %v3220_v14 = vpop.permute.xlu0 %836 }
 0x208   : > { %v3222_v15 = vpop.permute.xlu2 %1217 }
 0x209   : > { %2342 = vset.pattern.permute.xlu1 %v2863_v63 }
 0x20a   : > { %2333 = vset.pattern.permute.xlu2 %v2859_v59  ;;  %1251 = vperm.xlu1 %2342, %v3157_v52  }
 0x20b   : > { %1047 = vperm.xlu2 %2333, %v3157_v52  }
 0x20d   : > { %v3227_v16 = vpop.permute.xlu1 %945 }
 0x20e   : > { %v3229_v17 = vpop.permute.xlu0 %1277 }
 0x212   : > { %2343 = vset.pattern.permute.xlu1 %v2858_v58  ;;  %v3232_v18 = vpop.permute.xlu2 %1247 }
 0x213   : > { %2334 = vset.pattern.permute.xlu2 %v2862_v62  ;;  %1515 = vperm.xlu1 %2343, %v3157_v52  }
 0x214   : > { %1085 = vperm.xlu2 %2334, %v3157_v52  }
 0x215   : > { %v797_v20 = vpop.f32.mrf.mxu3 }
 0x216   : > { %v798_v21 = vadd.f32 %v2372_v19, %v797_v20  ;;  %v3240_v22 = vpop.permute.xlu1 %1005  ;;  %v3313_v20 = vld [vmem:[#allocation16 + $0x6] ss:$0 sm:$0xff] }
 0x217   : > { %v3242_v23 = vpop.permute.xlu0 %1511 }
 0x218   : > { %v803_v24 = vadd.f32 %v2372_v19, %v798_v21  ;;  %v3315_v21 = vld [vmem:[#allocation16 + $0x7] ss:$0 sm:$0xff] }
 0x21a   : > { %v807_v25 = vand.u32 2147483647, %v803_v24  ;;  %v805_v46 = vmax.f32 %v803_v24, 0.0  ;;  %v3317_v24 = vld [vmem:[#allocation16 + $0xa] ss:$0 sm:$0xff] }
 0x21b   : > { %2344 = vset.pattern.permute.xlu1 %v2865_v1  ;;  %v3245_v26 = vpop.permute.xlu2 %1523 }
 0x21c   : > { %v809_v27 = vsub.f32 0.0, %v807_v25  ;;  %2336 = vset.pattern.permute.xlu2 %v2864_v0  ;;  %1527 = vperm.xlu1 %2344, %v3157_v52   ;;  %v3320_v25 = vld [vmem:[#allocation16 + $0x5] ss:$0 sm:$0xff] }
 0x21d   : > { %1145 = vperm.xlu2 %2336, %v3157_v52   ;;  %v800_v28 = vpop.f32.mrf.mxu3 }
 0x21e   : > { %v811_v29 = vmul.f32 1.442695, %v809_v27  ;;  %v801_v30 = vadd.f32 %v2372_v19, %v800_v28 }
 0x220   : > { %2402 = vpow2.f32 %v811_v29  ;;  %v804_v31 = vadd.f32 %v2372_v19, %v801_v30  ;;  %v3250_v32 = vpop.permute.xlu1 %1043  ;;  %v2385_v30 = vld [vmem:[#allocation16] ss:$0 sm:$0xff] }
 0x221   : > { %v3252_v33 = vpop.permute.xlu0 %1617 }
 0x222   : > { %v808_v34 = vand.u32 2147483647, %v804_v31  ;;  %v806_v58 = vmax.f32 %v804_v31, 0.0 }
 0x224   : > { %v810_v35 = vsub.f32 0.0, %v808_v34  ;;  %2348 = vset.pattern.permute.xlu1 %v2861_v61 }
 0x225   : > { %2337 = vset.pattern.permute.xlu2 %v2866_v2  ;;  %v3256_v36 = vpop.permute.xlu2 %1543  ;;  %1621 = vperm.xlu1 %2348, %v3157_v52  }
 0x226   : > { %v2403_v37 = vpop.eup %2402  ;;  %v813_v38 = vmul.f32 1.442695, %v810_v35  ;;  %1183 = vperm.xlu2 %2337, %v3157_v52  }
 0x227   : > { %v815_v39 = vadd.f32 1.0, %v2403_v37 }
 0x228   : > { %2404 = vpow2.f32 %v813_v38 }
 0x229   : > { %2406 = vlog2.f32 %v815_v39  ;;  %v3260_v40 = vpop.permute.xlu1 %1081  ;;  %v3344_v39 = vld [vmem:[#allocation16 + $0xe] ss:$0 sm:$0xff] }
 0x22a   : > { %v841_v41 = vpop.permute.xlu0 %840 }
 0x22d   : > { %2349 = vset.pattern.permute.xlu1 %v2869_v5  ;;  %v2374_v5 = vld [vmem:[#allocation16 + $0x2] ss:$0 sm:$0xff] }
 0x22e   : > { %v2405_v42 = vpop.eup %2404  ;;  %2340 = vset.pattern.permute.xlu2 %v2868_v4  ;;  %v3264_v43 = vpop.permute.xlu2 %1637  ;;  %1641 = vperm.xlu1 %2349, %v3157_v52   ;;  %v2373_v4 = vld [vmem:[#allocation16 + $0x1] ss:$0 sm:$0xff] }
 0x22f   : > { %v2407_v44 = vpop.eup %2406  ;;  %v816_v45 = vadd.f32 1.0, %v2405_v42  ;;  %1319 = vperm.xlu2 %2340, %v3157_v52  }
 0x230   : > { %v818_v49 = vmul.f32 0.6931472, %v2407_v44 }
 0x231   : > { %2408 = vlog2.f32 %v816_v45  ;;  %v2387_v45 = vld [vmem:[#allocation16 + $0x8] ss:$0 sm:$0xff] }
 0x232   : > { %v3268_v50 = vadd.f32 %v818_v49, %v805_v46 }
 0x233   : > { %v3270_v53 = vpop.permute.xlu1 %1141 }
 0x234   : > { %v3274_v54 = vmul.f32 %v3268_v50, %v3141_v47  ;;  %v980_v55 = vpop.permute.xlu0 %979  ;;  %v888_v38 = vmul.f32 %v2374_v5, %v3268_v50  ;;  %v988_v44 = vmul.f32 %v3320_v25, %v3268_v50  ;;  %v827_v46 = vmul.f32 %v2385_v30, %v3268_v50 }
 0x236   : > { %v874_v57 = vmul.f32 %v3201_v9, %v3274_v54  ;;  %v913_v6 = vmul.f32 %v3218_v13, %v3274_v54  ;;  %v1254_v13 = vmul.f32 %v3232_v18, %v3274_v54  ;;  %v843_v27 = vmul.f32 %v3220_v14, %v3274_v54 }
 0x237   : > { %v2409_v56 = vpop.eup %2408  ;;  %2346 = vset.pattern.permute.xlu2 %v2872_v8  ;;  %v1284_v14 = vmul.f32 %v3229_v17, %v3274_v54  ;;  %v952_v42 = vmul.f32 %v3227_v16, %v3274_v54  ;;  %v982_v49 = vmul.f32 %v3207_v11, %v3274_v54  ;;  %v927_v16 = vmul.f32 %v2376_v7, %v3268_v50 }
 0x238   : > { %v820_v59 = vmul.f32 0.6931472, %v2409_v56  ;;  %v3279_v60 = vpop.permute.xlu2 %1671  ;;  %1567 = vperm.xlu2 %2346, %v3157_v52   ;;  %878 = vrot.lane.b32.xlu0 %v874_v57, %s2874_s16  ;;  %1256 = vst.msk [vmem:[#allocation4 + $0x18] sm:$0xff] %vm586_vm0, %v1254_v13  ;;  %v1118_v56 = vmul.f32 %v3213_v12, %v3274_v54  ;;  %v890_v57 = vmul.f32 1.442695, %v888_v38  ;;  %v1102_v11 = vmul.f32 %v2387_v45, %v3268_v50 }
 0x239   : > { %845 = vst.msk [vmem:[#allocation4] sm:$0xff] %vm586_vm0, %v843_v27  ;;  %v1012_v27 = vmul.f32 %v3240_v22, %v3274_v54 }
 0x23a   : > { %v3283_v61 = vadd.f32 %v820_v59, %v806_v58  ;;  %984 = vst.msk [vmem:[#allocation4 + $0x8] sm:$0xff] %vm586_vm0, %v982_v49  ;;  %v2388_v59 = vld [vmem:[#allocation16 + $0xc] ss:$0 sm:$0xff] }
 0x23b   : > { %1120 = vst.msk [vmem:[#allocation4 + $0x10] sm:$0xff] %vm586_vm0, %v1118_v56  ;;  %v1238_v13 = vmul.f32 %v2388_v59, %v3268_v50  ;;  %v1050_v56 = vmul.f32 %v3250_v32, %v3274_v54  ;;  %v1298_v32 = vmul.f32 %v3344_v39, %v3268_v50 }
 0x23c   : > { %v3287_v62 = vmul.f32 %v3283_v61, %v3143_v48  ;;  %v3289_v63 = vpop.permute.xlu1 %1179  ;;  %v3299_v8 = vmul.f32 %v2374_v5, %v3283_v61  ;;  %v3309_v19 = vmul.f32 %v2376_v7, %v3283_v61  ;;  %v3324_v18 = vmul.f32 %v3313_v20, %v3283_v61 }
 0x23d   : > { %v1116_v0 = vpop.permute.xlu0 %1115  ;;  %v3330_v28 = vmul.f32 %v3315_v21, %v3283_v61  ;;  %v3334_v29 = vmul.f32 %v3317_v24, %v3283_v61  ;;  %v3338_v35 = vmul.f32 %v2373_v4, %v3283_v61  ;;  %v3355_v17 = vmul.f32 %v3344_v39, %v3283_v61 }
 0x23e   : > { %v844_v1 = vmul.f32 %v841_v41, %v3287_v62  ;;  %v983_v2 = vmul.f32 %v980_v55, %v3287_v62  ;;  %v1119_v3 = vmul.f32 %v1116_v0, %v3287_v62  ;;  %v2386_v41 = vld [vmem:[#allocation16 + $0x4] ss:$0 sm:$0xff]  ;;  %v990_v0 = vmul.f32 1.442695, %v988_v44 }
 0x23f   : > { %v966_v58 = vmul.f32 %v2386_v41, %v3268_v50  ;;  %v1103_v5 = vmul.f32 %v2387_v45, %v3283_v61 }
 0x240   : > { %846 = vst.msk [vmem:[#allocation4 + $0x20] sm:$0xff] %vm586_vm0, %v844_v1  ;;  %2347 = vset.pattern.permute.xlu2 %v2873_v10  ;;  %917 = vrot.lane.b32.xlu0 %v913_v6, %s2875_s25  ;;  %v849_v10 = vmul.f32 %v2373_v4, %v3268_v50  ;;  %v829_v1 = vmul.f32 1.442695, %v827_v46  ;;  %v3370_v4 = vld [vmem:[#allocation16 + $0x9] ss:$0 sm:$0xff]  ;;  %v1224_v6 = vmul.f32 %v3222_v15, %v3274_v54 }
 0x241   : > { %985 = vst.msk [vmem:[#allocation4 + $0x28] sm:$0xff] %vm586_vm0, %v983_v2  ;;  %1601 = vperm.xlu2 %2347, %v3157_v52   ;;  %v3303_v9 = vpop.permute.xlu2 %871  ;;  %v967_v2 = vmul.f32 %v2386_v41, %v3283_v61  ;;  %v968_v7 = vmul.f32 1.442695, %v966_v58  ;;  %v828_v15 = vmul.f32 %v2385_v30, %v3283_v61  ;;  %v1106_v38 = vmul.f32 1.442695, %v1103_v5 }
 0x242   : > { %1121 = vst.msk [vmem:[#allocation4 + $0x30] sm:$0xff] %vm586_vm0, %v1119_v3  ;;  %v851_v34 = vmul.f32 1.442695, %v849_v10  ;;  %v929_v3 = vmul.f32 1.442695, %v927_v16 }
 0x243   : > { %v1240_v41 = vmul.f32 1.442695, %v1238_v13  ;;  %v831_v45 = vmul.f32 1.442695, %v828_v15  ;;  %v1088_v13 = vmul.f32 %v3260_v40, %v3274_v54  ;;  %v1148_v40 = vmul.f32 %v3270_v53, %v3274_v54  ;;  %v3432_v53 = vld [vmem:[#allocation16 + $0xd] ss:$0 sm:$0xff] }
 0x244   : > { %2410 = vpow2.f32 %v851_v34  ;;  %v1239_v34 = vmul.f32 %v2388_v59, %v3283_v61  ;;  %v1026_v59 = vmul.f32 %v3313_v20, %v3268_v50 }
 0x245   : > { %2412 = vpow2.f32 %v890_v57 }
 0x246   : > { %v1316_v31 = vpop.permute.xlu1 %1315  ;;  %2414 = vpow2.f32 %v990_v0  ;;  %v1028_v20 = vmul.f32 1.442695, %v1026_v59 }
 0x247   : > { %v1322_v37 = vmul.f32 %v1316_v31, %v3274_v54  ;;  %v1104_v31 = vmul.f32 1.442695, %v1102_v11  ;;  %2416 = vpow2.f32 %v829_v1 }
 0x248   : > { %956 = vrot.lane.b32.xlu0 %v952_v42, %s2876_s30  ;;  %2418 = vpow2.f32 %v929_v3  ;;  %v1242_v42 = vmul.f32 1.442695, %v1239_v34 }
 0x249   : > { %1288 = vrot.lane.b32.xlu2 %v1284_v14, %s2874_s16  ;;  %1326 = vrot.lane.b32.xlu1 %v1322_v37, %s2875_s25  ;;  %v970_v37 = vmul.f32 1.442695, %v967_v2  ;;  %v1124_v14 = vmul.f32 %v3370_v4, %v3268_v50  ;;  %2420 = vpow2.f32 %v968_v7 }
 0x24a   : > { %v3359_v55 = vpop.permute.xlu2 %910  ;;  %v2411_v10 = vpop.eup %2410  ;;  %2422 = vpow2.f32 %v1104_v31 }
 0x24b   : > { %v2413_v44 = vpop.eup %2412  ;;  %2424 = vpow2.f32 %v970_v37  ;;  %v1126_v49 = vmul.f32 1.442695, %v1124_v14 }
 0x24c   : > { %v2415_v46 = vpop.eup %2414  ;;  %2426 = vpow2.f32 %v1106_v38  ;;  %v1162_v38 = vmul.f32 %v3317_v24, %v3268_v50 }
 0x24d   : > { %v2417_v30 = vpop.eup %2416  ;;  %2428 = vpow2.f32 %v1240_v41 }
 0x24e   : > { %v2419_v16 = vpop.eup %2418  ;;  %833 = vst.msk [vmem:[#allocation3] sm:$0xff] %vm586_vm0, %v2417_v30  ;;  %2430 = vpow2.f32 %v1242_v42  ;;  %v1164_v41 = vmul.f32 1.442695, %v1162_v38  ;;  %v2382_v42 = vld [vmem:[#allocation16 + $0xb] ss:$0 sm:$0xff]  ;;  %v1260_v30 = vmul.f32 %v3432_v53, %v3268_v50 }
 0x24f   : > { %v3373_v12 = vpop.permute.xlu1 %1353  ;;  %v2421_v58 = vpop.eup %2420  ;;  %2432 = vpow2.f32 %v831_v45  ;;  %v1200_v24 = vmul.f32 %v2382_v42, %v3268_v50 }
 0x250   : > { %1016 = vrot.lane.b32.xlu0 %v1012_v27, %s2874_s16  ;;  %v2423_v0 = vpop.eup %2422  ;;  %2434 = vpow2.f32 %v1126_v49  ;;  %972 = vst.msk [vmem:[#allocation3 + $0x8] sm:$0xff] %vm586_vm0, %v2421_v58  ;;  %v1064_v27 = vmul.f32 %v3315_v21, %v3268_v50  ;;  %v3446_v58 = vld [vmem:[#allocation16 + $0xf] ss:$0 sm:$0xff] }
 0x251   : > { %1228 = vrot.lane.b32.xlu2 %v1224_v6, %s2876_s30  ;;  %857 = vrot.lane.b32.xlu1 %v2411_v10, %s2874_s16  ;;  %v2425_v11 = vpop.eup %2424  ;;  %1108 = vst.msk [vmem:[#allocation3 + $0x10] sm:$0xff] %vm586_vm0, %v2423_v0  ;;  %v1300_v6 = vmul.f32 1.442695, %v1298_v32  ;;  %2436 = vpow2.f32 %v1028_v20  ;;  %v1360_v0 = vmul.f32 %v3373_v12, %v3274_v54 }
 0x252   : > { %v2427_v1 = vpop.eup %2426  ;;  %973 = vst.msk [vmem:[#allocation3 + $0x28] sm:$0xff] %vm586_vm0, %v2425_v11  ;;  %v1066_v34 = vmul.f32 1.442695, %v1064_v27 }
 0x253   : > { %v3387_v22 = vpop.permute.xlu2 %949  ;;  %v2429_v3 = vpop.eup %2428  ;;  %1109 = vst.msk [vmem:[#allocation3 + $0x30] sm:$0xff] %vm586_vm0, %v2427_v1  ;;  %2438 = vpow2.f32 %v1300_v6 }
 0x254   : > { %v2431_v5 = vpop.eup %2430  ;;  %1244 = vst.msk [vmem:[#allocation3 + $0x18] sm:$0xff] %vm586_vm0, %v2429_v3  ;;  %2440 = vpow2.f32 %v1066_v34  ;;  %v953_v1 = vmul.f32 %v3387_v22, %v3287_v62  ;;  %v892_v34 = vmul.f32 1.442695, %v3299_v8 }
 0x255   : > { %v2433_v7 = vpop.eup %2432  ;;  %1245 = vst.msk [vmem:[#allocation3 + $0x38] sm:$0xff] %vm586_vm0, %v2431_v5  ;;  %2442 = vpow2.f32 %v1164_v41  ;;  %v931_v41 = vmul.f32 1.442695, %v3309_v19 }
 0x256   : > { %v2435_v39 = vpop.eup %2434  ;;  %834 = vst.msk [vmem:[#allocation3 + $0x20] sm:$0xff] %vm586_vm0, %v2433_v7 }
 0x257   : > { %v2437_v37 = vpop.eup %2436 }
 0x258   : > { %v3391_v57 = vpop.permute.xlu1 %1563  ;;  %1054 = vrot.lane.b32.xlu0 %v1050_v56, %s2875_s25 }
 0x259   : > { %896 = vrot.lane.b32.xlu2 %v2413_v44, %s2875_s25  ;;  %996 = vrot.lane.b32.xlu1 %v2415_v46, %s2874_s16  ;;  %v2439_v15 = vpop.eup %2438  ;;  %v875_v44 = vmul.f32 %v3303_v9, %v3287_v62  ;;  %v1186_v46 = vmul.f32 %v3289_v63, %v3274_v54  ;;  %v1202_v9 = vmul.f32 1.442695, %v1200_v24  ;;  %v1262_v63 = vmul.f32 1.442695, %v1260_v30 }
 0x25a   : > { %v2441_v45 = vpop.eup %2440  ;;  %v1030_v30 = vmul.f32 1.442695, %v3324_v18 }
 0x25b   : > { %v2443_v59 = vpop.eup %2442  ;;  %2444 = vpow2.f32 %v1202_v9 }
 0x25c   : > { %v3403_v2 = vpop.permute.xlu2 %1009  ;;  %2446 = vpow2.f32 %v1262_v63 }
 0x25d   : > { %v1013_v22 = vmul.f32 %v3403_v2, %v3287_v62 }
 0x260   : > { %1092 = vrot.lane.b32.xlu0 %v1088_v13, %s2876_s30  ;;  %v1125_v13 = vmul.f32 %v3370_v4, %v3283_v61 }
 0x261   : > { %935 = vrot.lane.b32.xlu2 %v2419_v16, %s2876_s30  ;;  %v3413_v10 = vpop.permute.xlu1 %1597  ;;  %1132 = vrot.lane.b32.xlu1 %v2435_v39, %s2874_s16  ;;  %v914_v16 = vmul.f32 %v3359_v55, %v3287_v62  ;;  %v1336_v55 = vmul.f32 %v3446_v58, %v3268_v50  ;;  %v2445_v12 = vpop.eup %2444  ;;  %v989_v50 = vmul.f32 %v3320_v25, %v3283_v61 }
 0x262   : > { %v2447_v20 = vpop.eup %2446  ;;  %v1128_v25 = vmul.f32 1.442695, %v1125_v13 }
 0x263   : > { %v1338_v54 = vmul.f32 1.442695, %v1336_v55  ;;  %v992_v5 = vmul.f32 1.442695, %v989_v50 }
 0x265   : > { %v1048_v31 = vpop.permute.xlu2 %1047  ;;  %2448 = vpow2.f32 %v1338_v54 }
 0x266   : > { %2450 = vpow2.f32 %v992_v5  ;;  %v1051_v27 = vmul.f32 %v1048_v31, %v3287_v62  ;;  %v2877_v31 = vmov 28   ;;  %v1302_v5 = vmul.f32 1.442695, %v3355_v17 }
 0x267   : > { %2452 = vpow2.f32 %v1128_v25  ;;  %2352 = vset.pattern.permute.xlu2 %v2877_v31  ;;  %2351 = vset.pattern.permute.xlu1 %v2877_v31  ;;  %v2878_v17 = vmov 29   ;;  %v2880_v31 = vmov 31  }
 0x268   : > { %1152 = vrot.lane.b32.xlu0 %v1148_v40, %s2874_s16  ;;  %v1201_v40 = vmul.f32 %v2382_v42, %v3283_v61  ;;  %2454 = vpow2.f32 %v892_v34  ;;  %v1261_v42 = vmul.f32 %v3432_v53, %v3283_v61  ;;  %v1337_v53 = vmul.f32 %v3446_v58, %v3283_v61 }
 0x269   : > { %1034 = vrot.lane.b32.xlu2 %v2437_v37, %s2875_s25  ;;  %1306 = vrot.lane.b32.xlu1 %v2439_v15, %s2875_s25  ;;  %v2879_v34 = vmov 32  }
 0x26a   : > { %v3423_v14 = vpop.permute.xlu1 %1281  ;;  %v1204_v8 = vmul.f32 1.442695, %v1201_v40  ;;  %v1340_v18 = vmul.f32 1.442695, %v1337_v53 }
 0x26b   : > { %v2449_v7 = vpop.eup %2448 }
 0x26c   : > { %v2451_v2 = vpop.eup %2450  ;;  %2456 = vpow2.f32 %v1204_v8 }
 0x26d   : > { %2458 = vpow2.f32 %v931_v41 }
 0x26e   : > { %v3428_v21 = vpop.permute.xlu2 %1085 }
 0x26f   : > { %v1089_v38 = vmul.f32 %v3428_v21, %v3287_v62  ;;  %v1264_v21 = vmul.f32 1.442695, %v1261_v42  ;;  %v2882_v42 = vmov 22  }
 0x270   : > { %1190 = vrot.lane.b32.xlu0 %v1186_v46, %s2875_s25  ;;  %v1222_v46 = vpop.permute.xlu0 %1221 }
 0x271   : > { %1072 = vrot.lane.b32.xlu2 %v2441_v45, %s2876_s30  ;;  %880 = vrot.lane.b32.xlu1 %v875_v44, %s2874_s16  ;;  %v2453_v44 = vpop.eup %2452  ;;  %2460 = vpow2.f32 %v1264_v21 }
 0x272   : > { %v2455_v45 = vpop.eup %2454  ;;  %2462 = vpow2.f32 %v1030_v30 }
 0x273   : > { %v1358_v49 = vpop.permute.xlu1 %1357  ;;  %v2457_v9 = vpop.eup %2456  ;;  %2464 = vpow2.f32 %v1340_v18 }
 0x274   : > { %v1361_v6 = vmul.f32 %v1358_v49, %v3287_v62 }
 0x277   : > { %v3444_v56 = vpop.permute.xlu2 %1145 }
 0x278   : > { %1364 = vrot.lane.b32.xlu0 %v1360_v0, %s2876_s30  ;;  %v1149_v19 = vmul.f32 %v3444_v56, %v3287_v62  ;;  %v3505_v63 = vpop.permute.xlu0 %1547  ;;  %v1068_v0 = vmul.f32 1.442695, %v3330_v28  ;;  %v1285_v28 = vmul.f32 %v3423_v14, %v3287_v62  ;;  %v853_v14 = vmul.f32 1.442695, %v3338_v35 }
 0x279   : > { %1170 = vrot.lane.b32.xlu2 %v2443_v59, %s2875_s25  ;;  %919 = vrot.lane.b32.xlu1 %v914_v16, %s2875_s25  ;;  %v2459_v16 = vpop.eup %2458 }
 0x27a   : > { %v2461_v55 = vpop.eup %2460  ;;  %2466 = vpow2.f32 %v1068_v0 }
 0x27c   : > { %v1252_v32 = vpop.permute.xlu1 %1251 }
 0x27d   : > { %v1255_v11 = vmul.f32 %v1252_v32, %v3287_v62 }
 0x27f   : > { %1257 = vst.msk [vmem:[#allocation4 + $0x38] sm:$0xff] %vm586_vm0, %v1255_v11  ;;  %v2463_v11 = vpop.eup %2462 }
 0x280   : > { %v3459_v3 = vpop.permute.xlu2 %1183  ;;  %1268 = vrot.lane.b32.xlu0 %v2447_v20, %s2874_s16  ;;  %v2465_v54 = vpop.eup %2464 }
 0x281   : > { %1208 = vrot.lane.b32.xlu2 %v2445_v12, %s2876_s30  ;;  %958 = vrot.lane.b32.xlu1 %v953_v1, %s2876_s30  ;;  %v1187_v56 = vmul.f32 %v3459_v3, %v3287_v62  ;;  %v1166_v1 = vmul.f32 1.442695, %v3334_v29  ;;  %v2467_v12 = vpop.eup %2466  ;;  %v1225_v29 = vmul.f32 %v1222_v46, %v3287_v62 }
 0x283   : > { %2468 = vpow2.f32 %v1166_v1 }
 0x284   : > { %2470 = vpow2.f32 %v853_v14  ;;  %v2125_v14 = vld [vmem:[#allocation10] sm:$0xff] }
 0x285   : > { %v3483_v4 = vpop.permute.xlu1 %1515  ;;  %2472 = vpow2.f32 %v1302_v5 }
 0x288   : > { %1344 = vrot.lane.b32.xlu0 %v2449_v7, %s2876_s30 }
 0x289   : > { %v1320_v39 = vpop.permute.xlu2 %1319  ;;  %1366 = vrot.lane.b32.xlu2 %v1361_v6, %s2876_s30  ;;  %1018 = vrot.lane.b32.xlu1 %v1013_v22, %s2874_s16  ;;  %v2469_v22 = vpop.eup %2468 }
 0x28a   : > { %v1323_v37 = vmul.f32 %v1320_v39, %v3287_v62  ;;  %v2471_v62 = vpop.eup %2470 }
 0x28b   : > { %v2473_v35 = vpop.eup %2472 }
 0x28e   : > { %v3495_v49 = vpop.permute.xlu1 %1527 }
 0x290   : > { %1328 = vrot.lane.b32.xlu0 %v1323_v37, %s2875_s25 }
 0x291   : > { %998 = vrot.lane.b32.xlu2 %v2451_v2, %s2874_s16  ;;  %1056 = vrot.lane.b32.xlu1 %v1051_v27, %s2875_s25 }
 0x292   : > { %v3479_v15 = vpop.permute.xlu2 %1567 }
 0x297   : > { %v3511_v32 = vpop.permute.xlu1 %1621 }
 0x298   : > { %898 = vrot.lane.b32.xlu0 %v2455_v45, %s2875_s25 }
 0x299   : > { %1134 = vrot.lane.b32.xlu2 %v2453_v44, %s2874_s16  ;;  %1094 = vrot.lane.b32.xlu1 %v1089_v38, %s2876_s30  ;;  %v2881_v38 = vmov 33  }
 0x29b   : > { %v3493_v24 = vpop.permute.xlu2 %1601 }
 0x2a0   : > { %937 = vrot.lane.b32.xlu0 %v2459_v16, %s2876_s30  ;;  %v3524_v3 = vpop.permute.xlu1 %1641  ;;  %v2883_v16 = vmov 26  }
 0x2a1   : > { %1210 = vrot.lane.b32.xlu2 %v2457_v9, %s2876_s30  ;;  %1154 = vrot.lane.b32.xlu1 %v1149_v19, %s2874_s16 }
 0x2a3   : > { %v1289_v59 = vpop.permute.xlu2 %1288 }
 0x2a4   : > { %1294 = vst.msk [vmem:[#allocation4 + $0x18] sm:$0xff] %vm863_vm5, %v1289_v59 }
 0x2a8   : > { %1036 = vrot.lane.b32.xlu0 %v2463_v11, %s2875_s25 }
 0x2a9   : > { %1270 = vrot.lane.b32.xlu2 %v2461_v55, %s2874_s16  ;;  %1192 = vrot.lane.b32.xlu1 %v1187_v56, %s2875_s25  ;;  %v2884_v56 = vmov 30  }
 0x2aa   : > { %v879_v58 = vpop.permute.xlu0 %878 }
 0x2ab   : > { %v3516_v61 = vpop.permute.xlu2 %1228  ;;  %884 = vst.msk [vmem:[#allocation4] sm:$0xff] %vm863_vm5, %v879_v58 }
 0x2b0   : > { %1074 = vrot.lane.b32.xlu0 %v2467_v12, %s2876_s30  ;;  %v1376_v12 = vlaneseq }
 0x2b1   : > { %1346 = vrot.lane.b32.xlu2 %v2465_v54, %s2876_s30  ;;  %1290 = vrot.lane.b32.xlu1 %v1285_v28, %s2874_s16  ;;  %v2126_v54 = vld [vmem:[#allocation10 + $0x8] sm:$0xff] }
 0x2b2   : > { %v918_v50 = vpop.permute.xlu0 %917  ;;  %626 = vmatpush.bf16.msra.mxu1 %v2126_v54  ;;  %vm3585_vm8 = vcmp.lt.s32.totalorder %v1376_v12, 512 }
 0x2b3   : > { %v897_v20 = vpop.permute.xlu2 %896  ;;  %923 = vst.msk [vmem:[#allocation4] sm:$0xff] %vm902_vm6, %v918_v50 }
 0x2b6   : > { %627 = vmatpush.bf16.msra.mxu1 %v2125_v14 }
 0x2b8   : > { %1172 = vrot.lane.b32.xlu0 %v2469_v22, %s2875_s25 }
 0x2b9   : > { %1695 = vperm.xlu2 %2352, %v3157_v52   ;;  %1230 = vrot.lane.b32.xlu1 %v1225_v29, %s2876_s30 }
 0x2ba   : > { %v957_v39 = vpop.permute.xlu0 %956 }
 0x2bb   : > { %v936_v6 = vpop.permute.xlu2 %935  ;;  %v1327_v7 = vpop.permute.xlu1 %1326  ;;  %962 = vst.msk [vmem:[#allocation4] sm:$0xff] %vm941_vm7, %v957_v39 }
 0x2bc   : > { %1332 = vst.msk [vmem:[#allocation4 + $0x18] sm:$0xff] %vm902_vm6, %v1327_v7 }
 0x2c0   : > { %1308 = vrot.lane.b32.xlu0 %v2473_v35, %s2875_s25 }
 0x2c1   : > { %2354 = vset.pattern.permute.xlu2 %v2878_v17  ;;  %859 = vrot.lane.b32.xlu1 %v2471_v62, %s2874_s16 }
 0x2c2   : > { %1715 = vperm.xlu2 %2354, %v3157_v52   ;;  %v1017_v27 = vpop.permute.xlu0 %1016 }
 0x2c3   : > { %v1035_v13 = vpop.permute.xlu2 %1034  ;;  %v858_v25 = vpop.permute.xlu1 %857  ;;  %1022 = vst.msk [vmem:[#allocation4 + $0x8] sm:$0xff] %vm863_vm5, %v1017_v27 }
 0x2c4   : > { %864 = vst.msk [vmem:[#allocation3] sm:$0xff] %vm863_vm5, %v858_v25  ;;  %v2482_v25 = vld [vmem:[%s3112_s5] sm:$0xff]  ;;  %s1886_s5 = scalar_lea.hbm %s3808_s12, %s2133_s14 }
 0x2c5   : > { %903 = vst.msk [vmem:[#allocation3] sm:$0xff] %vm902_vm6, %v897_v20  ;;  %2085 = vmatmul.msk.bf16.vlgmr.msra.gmra.mxu1 %vm586_vm0, %v2482_v25  ;;  %s1889_s2 = sshll.u32 %s1886_s5, 4  ;;  %s1890_s2 = int_to_ptr.hbm [resolvable:$true] %s1889_s2 }
 0x2c6   : > { %942 = vst.msk [vmem:[#allocation3] sm:$0xff] %vm941_vm7, %v936_v6  ;;  %s2767_s28 = sshra.s32 %s1890_s2, 4  ;;  %s2768_s28 = int_to_ptr.hbm [resolvable:$true] %s2767_s28 }
 0x2c7   : > { %s2769_s29 = scalar_lea.hbm %s2768_s28, 16  ;;  %p2774_p12 = scmp.lt.s32.totalorder %s2768_s28, %s3808_s12 }
 0x2c8   : > { %1675 = vperm.xlu0 %2350, %v3157_v52   ;;  %p2770_p1 = scmp.ne.s32.totalorder %s2768_s28, %s2769_s29 }
 0x2c9   : > { %1691 = vperm.xlu1 %2351, %v3151_v51  }
 0x2ca   : > { %2357 = vset.pattern.permute.xlu2 %v2879_v34  ;;  %v1055_v40 = vpop.permute.xlu0 %1054  ;;  %p2771_p3 = pnand %p2770_p1, %p3074_p4 }
 0x2cb   : > { %v1073_v2 = vpop.permute.xlu2 %1072  ;;  %1765 = vperm.xlu2 %2357, %v3151_v51   ;;  %v997_v37 = vpop.permute.xlu1 %996  ;;  %1060 = vst.msk [vmem:[#allocation4 + $0x8] sm:$0xff] %vm902_vm6, %v1055_v40 }
 0x2cc   : > { %1002 = vst.msk [vmem:[#allocation3 + $0x8] sm:$0xff] %vm863_vm5, %v997_v37  ;;  %p2772_p5 = pneg %p2771_p3 }
 0x2cd   : > { %1040 = vst.msk [vmem:[#allocation3 + $0x8] sm:$0xff] %vm902_vm6, %v1035_v13 }
 0x2ce   : > { %1078 = vst.msk [vmem:[#allocation3 + $0x8] sm:$0xff] %vm941_vm7, %v1073_v2 }
 0x2d0   : > { %2355 = vset.pattern.permute.xlu0 %v2880_v31 }
 0x2d1   : > { %2353 = vset.pattern.permute.xlu1 %v2878_v17  ;;  %1745 = vperm.xlu0 %2355, %v3151_v51  }
 0x2d2   : > { %1711 = vperm.xlu1 %2353, %v3151_v51   ;;  %v1093_v44 = vpop.permute.xlu0 %1092 }
 0x2d3   : > { %v1171_v8 = vpop.permute.xlu2 %1170  ;;  %2359 = vset.pattern.permute.xlu2 %v2881_v38  ;;  %v1133_v41 = vpop.permute.xlu1 %1132  ;;  %1098 = vst.msk [vmem:[#allocation4 + $0x8] sm:$0xff] %vm941_vm7, %v1093_v44 }
 0x2d4   : > { %1138 = vst.msk [vmem:[#allocation3 + $0x10] sm:$0xff] %vm863_vm5, %v1133_v41  ;;  %1785 = vperm.xlu2 %2359, %v3151_v51  }
 0x2d5   : > { %1176 = vst.msk [vmem:[#allocation3 + $0x10] sm:$0xff] %vm902_vm6, %v1171_v8 }
 0x2d9   : > { %2360 = vset.pattern.permute.xlu0 %v2881_v38 }
 0x2da   : > { %2356 = vset.pattern.permute.xlu1 %v2880_v31  ;;  %v1153_v21 = vpop.permute.xlu0 %1152  ;;  %1789 = vperm.xlu0 %2360, %v3157_v52  }
 0x2db   : > { %v1209_v45 = vpop.permute.xlu2 %1208  ;;  %v1307_v46 = vpop.permute.xlu1 %1306  ;;  %1749 = vperm.xlu1 %2356, %v3157_v52   ;;  %1158 = vst.msk [vmem:[#allocation4 + $0x10] sm:$0xff] %vm863_vm5, %v1153_v21 }
 0x2dc   : > { %1214 = vst.msk [vmem:[#allocation3 + $0x10] sm:$0xff] %vm941_vm7, %v1209_v45  ;;  %2361 = vset.pattern.permute.xlu2 %v2882_v42 }
 0x2dd   : > { %1585 = vperm.xlu2 %2361, %v3151_v51  }
 0x2e2   : > { %v1191_v9 = vpop.permute.xlu0 %1190  ;;  %2362 = vset.pattern.permute.xlu0 %v2882_v42 }
 0x2e3   : > { %v3561_v19 = vpop.permute.xlu2 %1366  ;;  %2358 = vset.pattern.permute.xlu1 %v2879_v34  ;;  %v881_v30 = vpop.permute.xlu1 %880  ;;  %1196 = vst.msk [vmem:[#allocation4 + $0x10] sm:$0xff] %vm902_vm6, %v1191_v9  ;;  %1589 = vperm.xlu0 %2362, %v3157_v52  }
 0x2e4   : > { %885 = vst.msk [vmem:[#allocation4 + $0x20] sm:$0xff] %vm863_vm5, %v881_v30  ;;  %1769 = vperm.xlu1 %2358, %v3157_v52  }
 0x2e5   : > { %2363 = vset.pattern.permute.xlu2 %v2883_v16  ;;  %1234 = vst.msk [vmem:[#allocation4 + $0x10] sm:$0xff] %vm941_vm7, %v3516_v61 }
 0x2e6   : > { %1659 = vperm.xlu2 %2363, %v3151_v51  }
 0x2ea   : > { %v1365_v18 = vpop.permute.xlu0 %1364 }
 0x2eb   : > { %v999_v53 = vpop.permute.xlu2 %998  ;;  %v920_v59 = vpop.permute.xlu1 %919  ;;  %2364 = vset.pattern.permute.xlu0 %v2883_v16  ;;  %1370 = vst.msk [vmem:[#allocation4 + $0x18] sm:$0xff] %vm941_vm7, %v1365_v18 }
 0x2ec   : > { %1003 = vst.msk [vmem:[#allocation3 + $0x28] sm:$0xff] %vm863_vm5, %v999_v53  ;;  %1663 = vperm.xlu0 %2364, %v3157_v52  }
 0x2ed   : > { %924 = vst.msk [vmem:[#allocation4 + $0x20] sm:$0xff] %vm902_vm6, %v920_v59 }
 0x2ee   : > { %2365 = vset.pattern.permute.xlu2 %v2884_v56 }
 0x2ef   : > { %1733 = vperm.xlu2 %2365, %v3151_v51  }
 0x2f2   : > { %v1269_v11 = vpop.permute.xlu0 %1268  ;;  %v1374_v29 = vld [vmem:[#allocation4] ss:$8 sm:$0xf]  ;;  %v1386_v39 = vld [vmem:[#allocation4 + $0x1] ss:$8 sm:$0xf] }
 0x2f3   : > { %v1135_v0 = vpop.permute.xlu2 %1134  ;;  %v959_v55 = vpop.permute.xlu1 %958  ;;  %1274 = vst.msk [vmem:[#allocation3 + $0x18] sm:$0xff] %vm863_vm5, %v1269_v11  ;;  %v1394_v34 = vld [vmem:[#allocation4 + $0x2] ss:$8 sm:$0xf] }
 0x2f4   : > { %1139 = vst.msk [vmem:[#allocation3 + $0x30] sm:$0xff] %vm863_vm5, %v1135_v0  ;;  %2366 = vset.pattern.permute.xlu0 %v2884_v56  ;;  %v1402_v31 = vld [vmem:[#allocation4 + $0x3] ss:$8 sm:$0xf] }
 0x2f5   : > { %1737 = vperm.xlu0 %2366, %v3157_v52   ;;  %963 = vst.msk [vmem:[#allocation4 + $0x20] sm:$0xff] %vm941_vm7, %v959_v55  ;;  %v1418_v9 = vld [vmem:[#allocation4 + $0x5] ss:$8 sm:$0xf] }
 0x2f6   : > { %1312 = vst.msk [vmem:[#allocation3 + $0x18] sm:$0xff] %vm902_vm6, %v1307_v46  ;;  %v1410_v46 = vld [vmem:[#allocation4 + $0x4] ss:$8 sm:$0xf] }
 0x2f7   : > { %v1426_v0 = vld [vmem:[#allocation4 + $0x6] ss:$8 sm:$0xf] }
 0x2fa   : > { %v1345_v51 = vpop.permute.xlu0 %1344 }
 0x2fb   : > { %v3580_v61 = vpop.permute.xlu2 %1210  ;;  %v1019_v58 = vpop.permute.xlu1 %1018  ;;  %1350 = vst.msk [vmem:[#allocation3 + $0x18] sm:$0xff] %vm941_vm7, %v1345_v51  ;;  %v1434_v51 = vld [vmem:[#allocation4 + $0x7] ss:$8 sm:$0xf] }
 0x2fc   : > { %1023 = vst.msk [vmem:[#allocation4 + $0x28] sm:$0xff] %vm863_vm5, %v1019_v58 }
 0x2fd   : > { %2367 = vset.pattern.permute.xlu0 %v2881_v38 }
 0x302   : > { %v1372_v52 = vld [vmem:[#allocation3] ss:$8 sm:$0xf]  ;;  %v1329_v20 = vpop.permute.xlu0 %1328  ;;  %v1383_v6 = vld [vmem:[#allocation3 + $0x1] ss:$8 sm:$0xf] }
 0x303   : > { %v1271_v28 = vpop.permute.xlu2 %1270  ;;  %v1057_v1 = vpop.permute.xlu1 %1056  ;;  %v1373_v50 = vmul.f32 0.0, %v1372_v52  ;;  %v1391_v17 = vld [vmem:[#allocation3 + $0x2] ss:$8 sm:$0xf] }
 0x304   : > { %1275 = vst.msk [vmem:[#allocation3 + $0x38] sm:$0xff] %vm863_vm5, %v1271_v28  ;;  %v1399_v37 = vld [vmem:[#allocation3 + $0x3] ss:$8 sm:$0xf] }
 0x305   : > { %v1375_v22 = vadd.f32 %v1374_v29, %v1373_v50  ;;  %1061 = vst.msk [vmem:[#allocation4 + $0x28] sm:$0xff] %vm902_vm6, %v1057_v1  ;;  %v1407_v41 = vld [vmem:[#allocation3 + $0x4] ss:$8 sm:$0xf] }
 0x306   : > { %v1415_v21 = vld [vmem:[#allocation3 + $0x5] ss:$8 sm:$0xf]  ;;  %v1423_v59 = vld [vmem:[#allocation3 + $0x6] ss:$8 sm:$0xf] }
 0x307   : > { %v1384_v7 = vmul.f32 %v1383_v6, %v1375_v22  ;;  %1380 = vst.msk [vmem:[#allocation4] ss:$8 sm:$0xf] %vm3585_vm8, %v1375_v22  ;;  %v1431_v11 = vld [vmem:[#allocation3 + $0x7] ss:$8 sm:$0xf] }
 0x309   : > { %v1387_v62 = vadd.f32 %v1386_v39, %v1384_v7 }
 0x30a   : > { %v3593_v13 = vpop.permute.xlu0 %898 }
 0x30b   : > { %v1095_v35 = vpop.permute.xlu1 %1094  ;;  %v1392_v27 = vmul.f32 %v1391_v17, %v1387_v62  ;;  %1388 = vst.msk [vmem:[#allocation4 + $0x1] ss:$8 sm:$0xf] %vm3585_vm8, %v1387_v62  ;;  %v1347_v28 = vpop.permute.xlu2 %1346 }
 0x30c   : > { %1099 = vst.msk [vmem:[#allocation4 + $0x28] sm:$0xff] %vm941_vm7, %v1095_v35 }
 0x30d   : > { %v1395_v2 = vadd.f32 %v1394_v34, %v1392_v27 }
 0x30f   : > { %v1400_v40 = vmul.f32 %v1399_v37, %v1395_v2  ;;  %1396 = vst.msk [vmem:[#allocation4 + $0x2] ss:$8 sm:$0xf] %vm3585_vm8, %v1395_v2 }
 0x311   : > { %v1403_v8 = vadd.f32 %v1402_v31, %v1400_v40 }
 0x312   : > { %v938_v44 = vpop.permute.xlu0 %937 }
 0x313   : > { %v1155_v38 = vpop.permute.xlu1 %1154  ;;  %v1408_v45 = vmul.f32 %v1407_v41, %v1403_v8  ;;  %1404 = vst.msk [vmem:[#allocation4 + $0x3] ss:$8 sm:$0xf] %vm3585_vm8, %v1403_v8  ;;  %v3619_v50 = vpop.permute.xlu2 %1695 }
 0x314   : > { %1159 = vst.msk [vmem:[#allocation4 + $0x30] sm:$0xff] %vm863_vm5, %v1155_v38 }
 0x315   : > { %v1411_v42 = vadd.f32 %v1410_v46, %v1408_v45 }
 0x317   : > { %v1416_v30 = vmul.f32 %v1415_v21, %v1411_v42  ;;  %1412 = vst.msk [vmem:[#allocation4 + $0x4] ss:$8 sm:$0xf] %vm3585_vm8, %v1411_v42 }
 0x319   : > { %v1419_v16 = vadd.f32 %v1418_v9, %v1416_v30 }
 0x31a   : > { %v1037_v18 = vpop.permute.xlu0 %1036 }
 0x31b   : > { %v1193_v53 = vpop.permute.xlu1 %1192  ;;  %v1424_v56 = vmul.f32 %v1423_v59, %v1419_v16  ;;  %1041 = vst.msk [vmem:[#allocation3 + $0x28] sm:$0xff] %vm902_vm6, %v1037_v18 }
 0x31c   : > { %1197 = vst.msk [vmem:[#allocation4 + $0x30] sm:$0xff] %vm902_vm6, %v1193_v53  ;;  %v3635_v7 = vpop.permute.xlu2 %1715 }
 0x31d   : > { %1420 = vst.msk [vmem:[#allocation4 + $0x5] ss:$8 sm:$0xf] %vm3585_vm8, %v1419_v16  ;;  %v1427_v55 = vadd.f32 %v1426_v0, %v1424_v56 }
 0x31f   : > { %v1432_v58 = vmul.f32 %v1431_v11, %v1427_v55  ;;  %1428 = vst.msk [vmem:[#allocation4 + $0x6] ss:$8 sm:$0xf] %vm3585_vm8, %v1427_v55 }
 0x321   : > { %v1435_v1 = vadd.f32 %v1434_v51, %v1432_v58 }
 0x322   : > { %v1075_v12 = vpop.permute.xlu0 %1074 }
 0x323   : > { %v1291_v54 = vpop.permute.xlu1 %1290  ;;  %1436 = vst.msk [vmem:[#allocation4 + $0x7] ss:$8 sm:$0xf] %vm3585_vm8, %v1435_v1 }
 0x324   : > { %1295 = vst.msk [vmem:[#allocation4 + $0x38] sm:$0xff] %vm863_vm5, %v1291_v54 }
 0x325   : > { %1333 = vst.msk [vmem:[#allocation4 + $0x38] sm:$0xff] %vm902_vm6, %v1329_v20  ;;  %v1766_v62 = vpop.permute.xlu2 %1765 }
 0x326   : > { %1371 = vst.msk [vmem:[#allocation4 + $0x38] sm:$0xff] %vm941_vm7, %v3561_v19 }
 0x327   : > { %1079 = vst.msk [vmem:[#allocation3 + $0x28] sm:$0xff] %vm941_vm7, %v1075_v12 }
 0x32a   : > { %v1173_v14 = vpop.permute.xlu0 %1172  ;;  %v3625_v20 = vld [vmem:[#allocation4] sm:$0xff]  ;;  %v3633_v6 = vld [vmem:[#allocation4 + $0x8] sm:$0xff]  ;;  %v3661_v8 = vld [vmem:[#allocation4 + $0x18] sm:$0xff] }
 0x32b   : > { %v1231_v52 = vpop.permute.xlu1 %1230  ;;  %1177 = vst.msk [vmem:[#allocation3 + $0x30] sm:$0xff] %vm902_vm6, %v1173_v14  ;;  %v1570_v19 = vmul.f32 %v3391_v57, %v3625_v20  ;;  %v1530_v29 = vmul.f32 %v3245_v26, %v3625_v20  ;;  %v1644_v39 = vmul.f32 %v3264_v43, %v3633_v6  ;;  %v1550_v57 = vmul.f32 %v3256_v36, %v3625_v20 }
 0x32c   : > { %1235 = vst.msk [vmem:[#allocation4 + $0x30] sm:$0xff] %vm941_vm7, %v1231_v52  ;;  %v1604_v43 = vmul.f32 %v3413_v10, %v3633_v6  ;;  %v1624_v10 = vmul.f32 %v3252_v33, %v3633_v6 }
 0x32d   : > { %1215 = vst.msk [vmem:[#allocation3 + $0x30] sm:$0xff] %vm941_vm7, %v3580_v61  ;;  %1574 = vrot.lane.b32.xlu0 %v1570_v19, %s2874_s16  ;;  %1534 = vrot.lane.b32.xlu1 %v1530_v29, %s2876_s30 }
 0x32e   : > { %v1786_v38 = vpop.permute.xlu2 %1785 }
 0x32f   : > { %v1792_v46 = vmul.f32 %v1786_v38, %v3661_v8 }
 0x332   : > { %v1309_v61 = vpop.permute.xlu0 %1308 }
 0x333   : > { %v860_v22 = vpop.permute.xlu1 %859  ;;  %1313 = vst.msk [vmem:[#allocation3 + $0x38] sm:$0xff] %vm902_vm6, %v1309_v61  ;;  %v1442_v17 = vld [vmem:[#allocation4 + $0x20] ss:$8 sm:$0xf] }
 0x334   : > { %865 = vst.msk [vmem:[#allocation3 + $0x20] sm:$0xff] %vm863_vm5, %v860_v22  ;;  %v1450_v40 = vld [vmem:[#allocation4 + $0x21] ss:$8 sm:$0xf] }
 0x335   : > { %904 = vst.msk [vmem:[#allocation3 + $0x20] sm:$0xff] %vm902_vm6, %v3593_v13  ;;  %1648 = vrot.lane.b32.xlu0 %v1644_v39, %s2874_s16  ;;  %1554 = vrot.lane.b32.xlu1 %v1550_v57, %s2875_s25  ;;  %v3652_v13 = vld [vmem:[#allocation4 + $0x10] sm:$0xff]  ;;  %v1772_v39 = vmul.f32 %v1766_v62, %v3661_v8 }
 0x336   : > { %943 = vst.msk [vmem:[#allocation3 + $0x20] sm:$0xff] %vm941_vm7, %v938_v44  ;;  %v1458_v45 = vld [vmem:[#allocation4 + $0x22] ss:$8 sm:$0xf]  ;;  %v1678_v33 = vmul.f32 %v3279_v60, %v3652_v13 }
 0x337   : > { %1351 = vst.msk [vmem:[#allocation3 + $0x38] sm:$0xff] %vm941_vm7, %v1347_v28  ;;  %v1466_v9 = vld [vmem:[#allocation4 + $0x23] ss:$8 sm:$0xf] }
 0x338   : > { %v1474_v56 = vld [vmem:[#allocation4 + $0x24] ss:$8 sm:$0xf]  ;;  %v1482_v60 = vld [vmem:[#allocation4 + $0x25] ss:$8 sm:$0xf] }
 0x339   : > { %v1490_v54 = vld [vmem:[#allocation4 + $0x26] ss:$8 sm:$0xf]  ;;  %v1498_v22 = vld [vmem:[#allocation4 + $0x27] ss:$8 sm:$0xf] }
 0x33a   : > { %v1676_v59 = vpop.permute.xlu0 %1675 }
 0x33b   : > { %v1692_v26 = vpop.permute.xlu1 %1691 }
 0x33c   : > { %v1698_v58 = vmul.f32 %v1692_v26, %v3652_v13 }
 0x33d   : > { %1608 = vrot.lane.b32.xlu1 %v1604_v43, %s2876_s30 }
 0x33e   : > { %v1439_v36 = vld [vmem:[#allocation3 + $0x20] ss:$8 sm:$0xf]  ;;  %v1447_v2 = vld [vmem:[#allocation3 + $0x21] ss:$8 sm:$0xf] }
 0x33f   : > { %v1440_v35 = vmul.f32 %v1439_v36, %v1435_v1  ;;  %v1455_v41 = vld [vmem:[#allocation3 + $0x22] ss:$8 sm:$0xf]  ;;  %v1463_v21 = vld [vmem:[#allocation3 + $0x23] ss:$8 sm:$0xf] }
 0x340   : > { %v1471_v53 = vld [vmem:[#allocation3 + $0x24] ss:$8 sm:$0xf]  ;;  %v1479_v55 = vld [vmem:[#allocation3 + $0x25] ss:$8 sm:$0xf] }
 0x341   : > { %v1443_v27 = vadd.f32 %v1442_v17, %v1440_v35  ;;  %v1487_v28 = vld [vmem:[#allocation3 + $0x26] ss:$8 sm:$0xf]  ;;  %v1495_v14 = vld [vmem:[#allocation3 + $0x27] ss:$8 sm:$0xf] }
 0x343   : > { %v1448_v37 = vmul.f32 %v1447_v2, %v1443_v27  ;;  %1444 = vst.msk [vmem:[#allocation4 + $0x20] ss:$8 sm:$0xf] %vm3585_vm8, %v1443_v27  ;;  %v1746_v12 = vpop.permute.xlu0 %1745 }
 0x344   : > { %v1712_v25 = vpop.permute.xlu1 %1711  ;;  %v1752_v29 = vmul.f32 %v1746_v12, %v3661_v8 }
 0x345   : > { %v1718_v34 = vmul.f32 %v1712_v25, %v3652_v13  ;;  %v1451_v31 = vadd.f32 %v1450_v40, %v1448_v37  ;;  %1628 = vrot.lane.b32.xlu1 %v1624_v10, %s2875_s25 }
 0x347   : > { %1722 = vrot.lane.b32.xlu0 %v1718_v34, %s2874_s16  ;;  %v1456_v44 = vmul.f32 %v1455_v41, %v1451_v31  ;;  %1452 = vst.msk [vmem:[#allocation4 + $0x21] ss:$8 sm:$0xf] %vm3585_vm8, %v1451_v31  ;;  %v3735_v31 = vld [vmem:[%s3805_s9] ss:$0 sm:$0xff] }
 0x349   : > { %v1459_v42 = vadd.f32 %v1458_v45, %v1456_v44  ;;  %v1506_v45 = vmul.f32 %v3735_v31, %v3141_v47  ;;  %v2392_v47 = vld [vmem:[#allocation13 + $0x2] ss:$0 sm:$0xff] }
 0x34b   : > { %v1464_v30 = vmul.f32 %v1463_v21, %v1459_v42  ;;  %1460 = vst.msk [vmem:[#allocation4 + $0x22] ss:$8 sm:$0xf] %vm3585_vm8, %v1459_v42  ;;  %v1586_v21 = vpop.permute.xlu2 %1585 }
 0x34d   : > { %v1467_v16 = vadd.f32 %v1466_v9, %v1464_v30  ;;  %1682 = vrot.lane.b32.xlu1 %v1678_v33, %s2876_s30 }
 0x34f   : > { %1796 = vrot.lane.b32.xlu0 %v1792_v46, %s2874_s16  ;;  %v1472_v18 = vmul.f32 %v1471_v53, %v1467_v16  ;;  %1468 = vst.msk [vmem:[#allocation4 + $0x23] ss:$8 sm:$0xf] %vm3585_vm8, %v1467_v16  ;;  %v1592_v16 = vmul.f32 %v1586_v21, %v3633_v6 }
 0x351   : > { %v1475_v0 = vadd.f32 %v1474_v56, %v1472_v18  ;;  %v2391_v18 = vld [vmem:[#allocation13 + $0x1] ss:$0 sm:$0xff] }
 0x353   : > { %v1480_v11 = vmul.f32 %v1479_v55, %v1475_v0  ;;  %1476 = vst.msk [vmem:[#allocation4 + $0x24] ss:$8 sm:$0xf] %vm3585_vm8, %v1475_v0 }
 0x355   : > { %v1483_v51 = vadd.f32 %v1482_v60, %v1480_v11  ;;  %1702 = vrot.lane.b32.xlu1 %v1698_v58, %s2875_s25 }
 0x357   : > { %v1488_v1 = vmul.f32 %v1487_v28, %v1483_v51  ;;  %1484 = vst.msk [vmem:[#allocation4 + $0x25] ss:$8 sm:$0xf] %vm3585_vm8, %v1483_v51  ;;  %v2132_v51 = vld [vmem:[#allocation19 + $0x8] sm:$0xff] }
 0x358   : > { %1835 = vmatpush.bf16.msrb.mxu3 %v2132_v51 }
 0x359   : > { %v1491_v52 = vadd.f32 %v1490_v54, %v1488_v1 }
 0x35b   : > { %v1496_v19 = vmul.f32 %v1495_v14, %v1491_v52  ;;  %1492 = vst.msk [vmem:[#allocation4 + $0x26] ss:$8 sm:$0xf] %vm3585_vm8, %v1491_v52  ;;  %v2393_v14 = vld [vmem:[#allocation13 + $0x3] ss:$0 sm:$0xff] }
 0x35d   : > { %v1499_v61 = vadd.f32 %v1498_v22, %v1496_v19  ;;  %1756 = vrot.lane.b32.xlu1 %v1752_v29, %s2876_s30  ;;  %v2131_v19 = vld [vmem:[#allocation19] sm:$0xff] }
 0x35e   : > { %1836 = vmatpush.bf16.msrb.mxu3 %v2131_v19 }
 0x35f   : > { %1500 = vst.msk [vmem:[#allocation4 + $0x27] ss:$8 sm:$0xf] %vm3585_vm8, %v1499_v61 }
 0x365   : > { %1776 = vrot.lane.b32.xlu1 %v1772_v39, %s2875_s25 }
 0x366   : > { %v3688_v57 = vld [vmem:[#allocation4 + $0x20] sm:$0xff]  ;;  %v3696_v36 = vld [vmem:[#allocation4 + $0x28] sm:$0xff] }
 0x367   : > { %v1531_v26 = vmul.f32 %v3495_v49, %v3688_v57  ;;  %v1571_v43 = vmul.f32 %v3479_v15, %v3688_v57  ;;  %v1551_v5 = vmul.f32 %v3505_v63, %v3688_v57  ;;  %v1645_v62 = vmul.f32 %v3524_v3, %v3696_v36  ;;  %v3704_v49 = vld [vmem:[#allocation4 + $0x30] sm:$0xff]  ;;  %v3712_v63 = vld [vmem:[#allocation4 + $0x38] sm:$0xff]  ;;  %v1790_v3 = vpop.permute.xlu0 %1789 }
 0x368   : > { %v1605_v35 = vmul.f32 %v3493_v24, %v3696_v36  ;;  %v1719_v15 = vmul.f32 %v3635_v7, %v3704_v49  ;;  %v1625_v17 = vmul.f32 %v3511_v32, %v3696_v36  ;;  %v1793_v25 = vmul.f32 %v1790_v3, %v3712_v63  ;;  %v629_v24 = vpop.f32.mrf.mxu1  ;;  %v1750_v7 = vpop.permute.xlu1 %1749 }
 0x369   : > { %1536 = vrot.lane.b32.xlu2 %v1531_v26, %s2876_s30  ;;  %684 = vst.msk [vmem:[#allocation2 + $0x1] sm:$0xff] %vm586_vm0, %v629_v24  ;;  %v1679_v27 = vmul.f32 %v1676_v59, %v3704_v49  ;;  %v1699_v32 = vmul.f32 %v3619_v50, %v3704_v49  ;;  %v1753_v40 = vmul.f32 %v1750_v7, %v3712_v63  ;;  %v2390_v59 = vld [vmem:[#allocation13] ss:$0 sm:$0xff] }
 0x36a   : > { %v1518_v50 = vmul.f32 %v3242_v23, %v3625_v20 }
 0x36c   : > { %v1520_v46 = vadd.f32 %v1518_v50, %v1506_v45 }
 0x36d   : > { %1576 = vrot.lane.b32.xlu1 %v1571_v43, %s2874_s16 }
 0x36f   : > { %v3722_v34 = vpop.permute.xlu0 %1589 }
 0x370   : > { %v631_v2 = vpop.f32.mrf.mxu1  ;;  %v1770_v37 = vpop.permute.xlu1 %1769  ;;  %v686_v56 = vld [vmem:[#allocation2] sm:$0xff] }
 0x371   : > { %1556 = vrot.lane.b32.xlu2 %v1551_v5, %s2875_s25  ;;  %685 = vst.msk [vmem:[#allocation2 + $0x9] sm:$0xff] %vm586_vm0, %v631_v2  ;;  %v1773_v41 = vmul.f32 %v1770_v37, %v3712_v63  ;;  %v694_v20 = vld [vmem:[#allocation2 + $0x1] sm:$0xff]  ;;  %v690_v55 = vmul.f32 %v2390_v59, %v686_v56 }
 0x372   : > { %v698_v60 = vmul.f32 %v2391_v18, %v694_v20 }
 0x374   : > { %v700_v54 = vadd.f32 %v698_v60, %v690_v55  ;;  %v2130_v60 = vld [vmem:[#allocation17 + $0x8] sm:$0xff] }
 0x375   : > { %1650 = vrot.lane.b32.xlu1 %v1645_v62, %s2874_s16  ;;  %1864 = vmatpush.bf16.msrb.mxu0 %v2130_v60 }
 0x377   : > { %v3728_v10 = vpop.permute.xlu0 %1663 }
 0x378   : > { %v687_v23 = vld [vmem:[#allocation2 + $0x8] sm:$0xff] }
 0x379   : > { %1610 = vrot.lane.b32.xlu2 %v1605_v35, %s2876_s30  ;;  %v691_v11 = vmul.f32 %v2390_v59, %v687_v23  ;;  %v695_v58 = vld [vmem:[#allocation2 + $0x9] sm:$0xff]  ;;  %v1660_v35 = vpop.permute.xlu2 %1659 }
 0x37a   : > { %v699_v28 = vmul.f32 %v2391_v18, %v695_v58  ;;  %v702_v1 = vld [vmem:[#allocation2 + $0x2] sm:$0xff]  ;;  %v703_v12 = vld [vmem:[#allocation2 + $0xa] sm:$0xff] }
 0x37b   : > { %v706_v52 = vmul.f32 %v2392_v47, %v702_v1  ;;  %v707_v22 = vmul.f32 %v2392_v47, %v703_v12  ;;  %v710_v61 = vld [vmem:[#allocation2 + $0x3] sm:$0xff]  ;;  %v711_v39 = vld [vmem:[#allocation2 + $0xb] sm:$0xff]  ;;  %v1519_v1 = vmul.f32 %v3483_v4, %v3688_v57  ;;  %v1507_v12 = vmul.f32 %v3735_v31, %v3143_v48 }
 0x37c   : > { %v701_v29 = vadd.f32 %v699_v28, %v691_v11  ;;  %v714_v43 = vmul.f32 %v2393_v14, %v710_v61  ;;  %v715_v5 = vmul.f32 %v2393_v14, %v711_v39  ;;  %v2129_v28 = vld [vmem:[#allocation17] sm:$0xff]  ;;  %v1667_v4 = vmul.f32 %v3728_v10, %v3704_v49 }
 0x37d   : > { %1724 = vrot.lane.b32.xlu1 %v1719_v15, %s2874_s16  ;;  %v708_v26 = vadd.f32 %v706_v52, %v700_v54  ;;  %1865 = vmatpush.bf16.msrb.mxu0 %v2129_v28 }
 0x37e   : > { %v709_v62 = vadd.f32 %v707_v22, %v701_v29  ;;  %v1593_v29 = vmul.f32 %v3722_v34, %v3696_v36 }
 0x37f   : > { %v3740_v44 = vpop.permute.xlu0 %1737  ;;  %v716_v15 = vadd.f32 %v714_v43, %v708_v26 }
 0x381   : > { %1630 = vrot.lane.b32.xlu2 %v1625_v17, %s2875_s25  ;;  %v717_v17 = vadd.f32 %v715_v5, %v709_v62  ;;  %v718_v3 = vsub.f32 0.0, %v716_v15 }
 0x385   : > { %1798 = vrot.lane.b32.xlu1 %v1793_v25, %s2874_s16  ;;  %v719_v25 = vsub.f32 0.0, %v717_v17 }
 0x387   : > { %v722_v2 = vmul.f32 1.442695, %v719_v25 }
 0x389   : > { %1684 = vrot.lane.b32.xlu2 %v1679_v27, %s2876_s30  ;;  %v720_v27 = vmul.f32 1.442695, %v718_v3 }
 0x38b   : > { %2474 = vpow2.f32 %v720_v27 }
 0x38c   : > { %2476 = vpow2.f32 %v722_v2 }
 0x391   : > { %1704 = vrot.lane.b32.xlu2 %v1699_v32, %s2875_s25  ;;  %v2475_v45 = vpop.eup %2474 }
 0x392   : > { %v724_v21 = vadd.f32 1.0, %v2475_v45 }
 0x394   : > { %2478 = vrcp.f32 %v724_v21 }
 0x399   : > { %1758 = vrot.lane.b32.xlu2 %v1753_v40, %s2876_s30  ;;  %v1666_v40 = vmul.f32 %v1660_v35, %v3652_v13  ;;  %s2773_s30 = scalar_lea.hbm %s3808_s12, 32 }
 0x39a   : > { %p2775_p7 = scmp.lt.s32.totalorder %s2773_s30, %s2769_s29 }
 0x39c   : > { %p2776_p8 = por %p2775_p7, %p2774_p12 }
 0x39e   : > { %p2777_p9 = pnand %p2776_p8, %p2772_p5 }
 0x39f   : > { %v1535_v38 = vpop.permute.xlu1 %1534  ;;  %v1575_v9 = vpop.permute.xlu0 %1574 }
 0x3a0   : > { %v1540_v42 = vadd.f32 %v1535_v38, %v1520_v46  ;;  %v2477_v46 = vpop.eup %2476 }
 0x3a1   : > { %1778 = vrot.lane.b32.xlu2 %v1773_v41, %s2875_s25  ;;  %v1734_v41 = vpop.permute.xlu2 %1733 }
 0x3a2   : > { %v1740_v13 = vmul.f32 %v1734_v41, %v3661_v8  ;;  %v1521_v8 = vadd.f32 %v1519_v1, %v1507_v12 }
 0x3a7   : > { %v1555_v30 = vpop.permute.xlu1 %1554  ;;  %v1649_v37 = vpop.permute.xlu0 %1648 }
 0x3a8   : > { %v1560_v33 = vadd.f32 %v1555_v30, %v1540_v42  ;;  %v725_v30 = vadd.f32 1.0, %v2477_v46 }
 0x3aa   : > { %v1580_v53 = vadd.f32 %v1575_v9, %v1560_v33  ;;  %2480 = vrcp.f32 %v725_v30 }
 0x3ac   : > { %v1594_v0 = vadd.f32 %v1592_v16, %v1580_v53  ;;  %v2479_v16 = vpop.eup %2478 }
 0x3ad   : > { %v728_v56 = vmul.f32 %v2479_v16, %v716_v15 }
 0x3af   : > { %v1609_v6 = vpop.permute.xlu1 %1608 }
 0x3b0   : > { %v1614_v24 = vadd.f32 %v1609_v6, %v1594_v0  ;;  %v2481_v59 = vpop.eup %2480 }
 0x3b1   : > { %v729_v20 = vmul.f32 %v2481_v59, %v717_v17  ;;  %v1741_v17 = vmul.f32 %v3740_v44, %v3712_v63 }
 0x3b3   : > { %v1809_v55 = vpack.c.bf16 %v729_v20, %v728_v56 }
 0x3b5   : > { %2106 = vmatmul.msk.bf16.vlgmr.msrb.gmra.mxu3 %vm586_vm0, %v1809_v55 }
 0x3b7   : > { %v1629_v7 = vpop.permute.xlu1 %1628 }
 0x3b8   : > { %v1634_v32 = vadd.f32 %v1629_v7, %v1614_v24 }
 0x3b9   : > { %v1723_v23 = vpop.permute.xlu0 %1722 }
 0x3ba   : > { %v1654_v38 = vadd.f32 %v1649_v37, %v1634_v32 }
 0x3bc   : > { %v1668_v50 = vadd.f32 %v1666_v40, %v1654_v38 }
 0x3bf   : > { %v1683_v42 = vpop.permute.xlu1 %1682 }
 0x3c0   : > { %v1688_v9 = vadd.f32 %v1683_v42, %v1668_v50 }
 0x3c1   : > { %v1797_v49 = vpop.permute.xlu0 %1796 }
 0x3c3   : > { %v1537_v33 = vpop.permute.xlu2 %1536 }
 0x3c4   : > { %v1541_v52 = vadd.f32 %v1537_v33, %v1521_v8 }
 0x3c7   : > { %v1703_v53 = vpop.permute.xlu1 %1702 }
 0x3c8   : > { %v1708_v18 = vadd.f32 %v1703_v53, %v1688_v9 }
 0x3ca   : > { %v1728_v0 = vadd.f32 %v1723_v23, %v1708_v18 }
 0x3cb   : > { %v1557_v11 = vpop.permute.xlu2 %1556 }
 0x3cc   : > { %v1742_v58 = vadd.f32 %v1740_v13, %v1728_v0  ;;  %v1561_v6 = vadd.f32 %v1557_v11, %v1541_v52 }
 0x3cf   : > { %v1757_v47 = vpop.permute.xlu1 %1756 }
 0x3d0   : > { %v1762_v25 = vadd.f32 %v1757_v47, %v1742_v58 }
 0x3d3   : > { %v1611_v51 = vpop.permute.xlu2 %1610 }
 0x3d7   : > { %v1777_v54 = vpop.permute.xlu1 %1776 }
 0x3d8   : > { %v1782_v24 = vadd.f32 %v1777_v54, %v1762_v25 }
 0x3da   : > { %v1802_v32 = vadd.f32 %v1797_v49, %v1782_v24 }
 0x3db   : > { %v1631_v14 = vpop.permute.xlu2 %1630 }
 0x3df   : > { %v1577_v19 = vpop.permute.xlu1 %1576 }
 0x3e0   : > { %v1581_v22 = vadd.f32 %v1577_v19, %v1561_v6 }
 0x3e2   : > { %v1595_v61 = vadd.f32 %v1593_v29, %v1581_v22 }
 0x3e3   : > { %v1685_v39 = vpop.permute.xlu2 %1684 }
 0x3e4   : > { %v1615_v26 = vadd.f32 %v1611_v51, %v1595_v61 }
 0x3e6   : > { %v1635_v43 = vadd.f32 %v1631_v14, %v1615_v26 }
 0x3e7   : > { %v1651_v5 = vpop.permute.xlu1 %1650 }
 0x3e8   : > { %v1655_v57 = vadd.f32 %v1651_v5, %v1635_v43 }
 0x3ea   : > { %v1669_v62 = vadd.f32 %v1667_v4, %v1655_v57 }
 0x3eb   : > { %v1705_v48 = vpop.permute.xlu2 %1704 }
 0x3ec   : > { %v1689_v31 = vadd.f32 %v1685_v39, %v1669_v62 }
 0x3ee   : > { %v1709_v35 = vadd.f32 %v1705_v48, %v1689_v31 }
 0x3ef   : > { %v1725_v15 = vpop.permute.xlu1 %1724 }
 0x3f0   : > { %v1729_v36 = vadd.f32 %v1725_v15, %v1709_v35 }
 0x3f2   : > { %v1743_v34 = vadd.f32 %v1741_v17, %v1729_v36 }
 0x3f3   : > { %v1759_v3 = vpop.permute.xlu2 %1758 }
 0x3f4   : > { %v1763_v27 = vadd.f32 %v1759_v3, %v1743_v34 }
 0x3f7   : > { %v1799_v10 = vpop.permute.xlu1 %1798 }
 0x3fb   : > { %v1779_v7 = vpop.permute.xlu2 %1778 }
 0x3fc   : > { %v1783_v2 = vadd.f32 %v1779_v7, %v1763_v27 }
 0x3fe   : > { %v1803_v37 = vadd.f32 %v1799_v10, %v1783_v2 }
 0x400   : > { %v1804_v40 = vpack.c.bf16 %v1803_v37, %v1802_v32 }
 0x402   : > { %2115 = vmatmul.msk.bf16.vlgmr.msrb.gmra.mxu0 %vm586_vm0, %v1804_v40 }
 0x438   : > { %v1838_v38 = vpop.f32.mrf.mxu3 }
 0x440   : > { %v1840_v41 = vpop.f32.mrf.mxu3 }
 0x47f   : > { %v1867_v63 = vpop.f32.mrf.mxu0 }
 0x480   : > { %v1868_v44 = vadd.f32 %v1867_v63, %v1838_v38 }
 0x482   : > { %1872 = vst.msk [vmem:[%s561_s27] sm:$0xff] %vm586_vm0, %v1868_v44 }
 0x487   : > { %v1869_v50 = vpop.f32.mrf.mxu0 }
 0x488   : > { %v1870_v45 = vadd.f32 %v1869_v50, %v1840_v41 }
 0x48a   : > { %1873 = vst.msk [vmem:[%s561_s27 + $0x8] sm:$0xff] %vm586_vm0, %v1870_v45 }
 0x48b   : > { %2780 = shalt.err (!%p2777_p9)
}
 0x48c   : > { %s2885_s3 = smov 128   ;;  %s2886_s17 = smov 8  }
 0x48d   : > { %2168 = dma.vmem_to_hbm [thread:$0]  (%p3074_p4), %s1888_s1, 256, %s1890_s2, %s1875_s4, %s2885_s3, %s2885_s3, %s2886_s17  }
 0x48e PF: > { %s1904_s14 = sand.u32 1, %s2823_s21   ;;  %p3836_p10 = scmp.ge.s32.totalorder %s2835_s24, 2 }
 0x48f   : > { %s1905_s27 = scalar_lea.sflag [#allocation7], %s1904_s14 }
 0x490   : > { %p2200_p13 = pnand %p3836_p10, %p3078_p6 }
 0x492   : > { %p2201_p11 = pneg %p2200_p13 }
 0x494   : > { %2818 = dma.done.wait (%p2201_p11), %s1905_s27, 256  }
 0x495   : > { %2820 = vsyncadd (%p2201_p11), %s1905_s27, 4294967040  ;;  %p29_p0 = scmp.ge.s32.totalorder %s3048_s13, 4   ;;  %s3837_s21 = smov %s2827_s22 }
 0x496   : > { %s3838_s22 = smov %s2831_s23  ;;  %s3839_s23 = smov %s3059_s26 }
 0x497   : > { %s3840_s24 = smov %s3048_s13  ;;  %31 = sbr.rel (!%p29_p0) target bundleno = 17 (0x11), region = 175 }
 0x49c   :  { %1911 = vsyncpa [#allocation6], 1 }
 0x49d   :  { %1913 = vsyncpa [#allocation6 + $0x1], 1 }
 0x49e   :  { %1914 = vsyncpa [#allocation9], 1 }
 0x49f   :  { %1915 = vsyncpa [#allocation12], 1 }
 0x4a0   :  { %1916 = vsyncpa [#allocation15], 1 }
 0x4a1   :  { %1917 = vsyncpa [#allocation18], 1 }
 0x4a2   :  { %1918 = vsyncpa [#allocation7], 1 }
 0x4a3   :  { %1920 = vsyncpa [#allocation7 + $0x1], 1 }

</bundles_post_ra>
